<compile_context>
chip_gen: v7x
topology: tpu7x:2x2x1
jax: 0.10.0
libtpu: 0.0.40
codegen_flags: <defaults>
</compile_context>

<pallas_src>
import math
import functools

import numpy as np
import jax
import jax.numpy as jnp
from jax.experimental import pallas as pl
from jax.experimental.pallas import tpu as pltpu


# ---------------------------------------------------------------------------
# Fused Pallas kernel: input proj + PE + num_layers post-norm encoder layers
# ---------------------------------------------------------------------------

def _fused_encoder_kernel(src_ref, pe_ref, enc_w_ref,
                          wqkv_ref, bqkv_ref, wo_ref, bo_ref,
                          ln1_g_ref, ln1_b_ref,
                          ff1_w_ref, ff1_b_ref, ff2_w_ref, ff2_b_ref,
                          ln2_g_ref, ln2_b_ref,
                          am_ref, vm_ref,
                          o_ref, *, Bi, S, d, nheads, num_layers, eps=1e-5):
    """Bi = batch elements handled by this grid step (1 on v7x, B otherwise)."""
    dh = d // nheads
    scale = 1.0 / math.sqrt(dh)

    def layer_norm(z, g, b):
        mu = jnp.mean(z, axis=-1, keepdims=True)
        var = jnp.mean((z - mu) ** 2, axis=-1, keepdims=True)
        return (z - mu) * jax.lax.rsqrt(var + eps) * g + b

    # --- input Linear(4 -> d) as 4 broadcast-FMAs on the VPU ----------------
    # (a K=4 MXU matmul would burn a whole MXU pass for 4 useful rows)
    src = src_ref[...]                                   # (Bi*S, 4)
    enc_w = enc_w_ref[...]                               # (4, d)
    x = src[:, 0:1] * enc_w[0:1, :]
    for i in range(1, 4):
        x = x + src[:, i:i + 1] * enc_w[i:i + 1, :]
    # positional encoding (Linear bias already folded in), broadcast over batch
    x = x + jnp.tile(pe_ref[...], (Bi, 1))               # (Bi*S, d)

    am = am_ref[...]   # (Bi*S, G*S) additive cross-batch mask (0 / -1e30)
    vm = vm_ref[...]   # (G*S, d)    head block-diagonal 0/1 mask

    # --- post-norm transformer encoder layers (static unroll, num_layers small)
    for l in range(num_layers):
        # fused QKV projection: one (d, 3d) matmul, 3d-lane-wide output slab
        qkv = jnp.dot(x, wqkv_ref[l], preferred_element_type=jnp.float32)
        qkv = qkv + bqkv_ref[l]                           # (Bi*S, 3d)
        q = qkv[:, 0:d]
        k = qkv[:, d:2 * d]
        v = qkv[:, 2 * d:3 * d]

        # Block-diagonal batched attention: stack (head, batch) groups along
        # sublanes (rows) of K / V once.  Row g*S+j of kb/vb holds batch b's
        # token j restricted (by vm) to head h's feature lanes, with
        # g = h*Bi + b.  One scores matmul + one PV matmul + one denominator
        # matmul then cover every (b, h) pair simultaneously.
        kb = jnp.tile(k, (nheads, 1)) * vm                # (G*S, d)
        vb = jnp.tile(v, (nheads, 1)) * vm                # (G*S, d)

        s = jnp.einsum("id,jd->ij", q, kb,
                       preferred_element_type=jnp.float32) * scale + am
        s = s - jnp.max(s, axis=-1, keepdims=True)        # safe: row max is finite
        e = jnp.exp(s)                                    # (Bi*S, G*S); masked cols -> 0

        attn_un = jnp.dot(e, vb, preferred_element_type=jnp.float32)  # (Bi*S, d)
        denom = jnp.dot(e, vm, preferred_element_type=jnp.float32)    # per-head sums
        attn = attn_un * pl.reciprocal(denom, approx=True)

        # output projection + residual + LayerNorm
        attn = jnp.dot(attn, wo_ref[l],
                       preferred_element_type=jnp.float32) + bo_ref[l]
        x = layer_norm(x + attn, ln1_g_ref[l], ln1_b_ref[l])

        # feed-forward (ReLU) + residual + LayerNorm
        h1 = jnp.dot(x, ff1_w_ref[l],
                     preferred_element_type=jnp.float32) + ff1_b_ref[l]
        h1 = jnp.maximum(h1, 0.0)
        ff = jnp.dot(h1, ff2_w_ref[l],
                     preferred_element_type=jnp.float32) + ff2_b_ref[l]
        x = layer_norm(x + ff, ln2_g_ref[l], ln2_b_ref[l])

    o_ref[...] = x


# ---------------------------------------------------------------------------
# Parameters
# ---------------------------------------------------------------------------

def make_pos_encoding(d_model, max_len=101):
    position = jnp.arange(max_len, dtype=jnp.float32)[:, None]
    div_term = jnp.exp(jnp.arange(0, d_model, 2, dtype=jnp.float32)
                       * -(math.log(10000.0) / d_model))
    pe = jnp.zeros((max_len, d_model), dtype=jnp.float32)
    pe = pe.at[:, 0::2].set(jnp.sin(position * div_term))
    pe = pe.at[:, 1::2].set(jnp.cos(position * div_term))
    return pe                                                   # (max_len, d)


def init_params(key, input_dim, hidden_dim, nheads, num_layers):
    d = input_dim
    scale = 0.05

    def nrm(k, shape):
        return scale * jax.random.normal(k, shape, dtype=jnp.float32)

    n_per_layer = 12
    keys = jax.random.split(key, 2 + num_layers * n_per_layer)
    params = {
        "enc_w": nrm(keys[0], (4, d)),      # nn.Linear(4, d), stored (din, dout)
        "enc_b": nrm(keys[1], (1, d)),
        "pe2d": make_pos_encoding(d),
    }
    wqkv, bqkv, wo, bo = [], [], [], []
    ff1w, ff1b, ff2w, ff2b = [], [], [], []
    for l in range(num_layers):
        lk = keys[2 + l * n_per_layer: 2 + (l + 1) * n_per_layer]
        wq, bq = nrm(lk[0], (d, d)), nrm(lk[1], (d,))
        wk, bk = nrm(lk[2], (d, d)), nrm(lk[3], (d,))
        wv, bv = nrm(lk[4], (d, d)), nrm(lk[5], (d,))
        wqkv.append(jnp.concatenate([wq, wk, wv], axis=1))      # (d, 3d)
        bqkv.append(jnp.concatenate([bq, bk, bv])[None, :])     # (1, 3d)
        wo.append(nrm(lk[6], (d, d)))
        bo.append(nrm(lk[7], (d,))[None, :])
        ff1w.append(nrm(lk[8], (d, hidden_dim)))
        ff1b.append(nrm(lk[9], (hidden_dim,))[None, :])
        ff2w.append(nrm(lk[10], (hidden_dim, d)))
        ff2b.append(nrm(lk[11], (d,))[None, :])
    params.update({
        "wqkv": jnp.stack(wqkv), "bqkv": jnp.stack(bqkv),
        "wo": jnp.stack(wo), "bo": jnp.stack(bo),
        "ln1_g": jnp.ones((num_layers, 1, d), jnp.float32),
        "ln1_b": jnp.zeros((num_layers, 1, d), jnp.float32),
        "ff1_w": jnp.stack(ff1w), "ff1_b": jnp.stack(ff1b),
        "ff2_w": jnp.stack(ff2w), "ff2_b": jnp.stack(ff2b),
        "ln2_g": jnp.ones((num_layers, 1, d), jnp.float32),
        "ln2_b": jnp.zeros((num_layers, 1, d), jnp.float32),
    })
    return params


# ---------------------------------------------------------------------------
# Constant attention masks (constant-folded under jit)
# ---------------------------------------------------------------------------

def _attention_masks(Bi, S, nheads, dh):
    """am: (Bi*S, nheads*Bi*S) additive cross-batch mask (0 valid, -1e30 masked)
       vm: (nheads*Bi*S, d)    0/1 head block-diagonal mask; also serves as the
                               'ones' operand that produces per-head softmax
                               denominators broadcast across that head's lanes."""
    d = nheads * dh
    GS = nheads * Bi * S
    col = jnp.arange(GS)
    col_head = col // (Bi * S)                  # group ordering g = h*Bi + b
    col_batch = (col % (Bi * S)) // S
    row_batch = jnp.arange(Bi * S) // S
    am = jnp.where(row_batch[:, None] == col_batch[None, :],
                   0.0, -1e30).astype(jnp.float32)
    feat_head = jnp.arange(d) // dh
    vm = (col_head[:, None] == feat_head[None, :]).astype(jnp.float32)
    return am, vm


# ---------------------------------------------------------------------------
# Forward (single fused pallas_call)
# ---------------------------------------------------------------------------

@functools.partial(jax.jit, static_argnames=("nheads", "num_layers", "batch_block"))
def _forward_impl(src, params, *, nheads, num_layers, batch_block):
    # src: (S, B, 4) float32, sequence-first like the PyTorch module
    S, B, fin = src.shape
    d = params["enc_w"].shape[1]
    dh = d // nheads
    Bi = batch_block
    nsteps = B // Bi

    # batch-first internal layout (tokens of one batch element contiguous)
    src_bf = src.transpose(1, 0, 2).reshape(B * S, fin)          # (B*S, 4)
    # fold the input-Linear bias into the positional-encoding table
    pe_b = params["pe2d"][:S] + params["enc_b"]                  # (S, d)
    am, vm = _attention_masks(Bi, S, nheads, dh)

    operands = (src_bf, pe_b, params["enc_w"],
                params["wqkv"], params["bqkv"], params["wo"], params["bo"],
                params["ln1_g"], params["ln1_b"],
                params["ff1_w"], params["ff1_b"],
                params["ff2_w"], params["ff2_b"],
                params["ln2_g"], params["ln2_b"],
                am, vm)

    def _full(shape):              # whole-array, VMEM-resident block
        n = len(shape)
        return pl.BlockSpec(tuple(shape), lambda i, _n=n: (0,) * _n)

    in_specs = [pl.BlockSpec((Bi * S, fin), lambda i: (i, 0))]
    in_specs += [_full(a.shape) for a in operands[1:]]
    out_spec = pl.BlockSpec((Bi * S, d), lambda i: (i, 0))

    # Everything is VMEM-resident; make the budget explicit so scaling d_model /
    # num_layers can't silently spill (v7x has 64 MiB physical VMEM).
    resident_bytes = sum(int(np.prod(a.shape)) * 4 for a in operands) + Bi * S * d * 4
    vmem_limit = 32 * 1024 * 1024
    assert 3 * resident_bytes < vmem_limit, (
        "model too large for the all-resident single-kernel design; "
        "tile layers over a grid axis instead")

    out_bf = pl.pallas_call(
        functools.partial(_fused_encoder_kernel, Bi=Bi, S=S, d=d,
                          nheads=nheads, num_layers=num_layers),
        grid=(nsteps,),
        in_specs=in_specs,
        out_specs=out_spec,
        out_shape=jax.ShapeDtypeStruct((B * S, d), jnp.float32),
        compiler_params=pltpu.CompilerParams(
            dimension_semantics=("parallel",),
            vmem_limit_bytes=vmem_limit),
    )(*operands)

    # back to sequence-first (S, B, d)
    return out_bf.reshape(B, S, d).transpose(1, 0, 2)


def _tensorcores_per_chip():
    try:
        kind = jax.devices()[0].device_kind.lower()
    except Exception:
        return 1
    return 2 if "v7" in kind else 1


def forward(src, params, nheads, num_layers):
    S, B, _ = src.shape
    assert S <= params["pe2d"].shape[0], "sequence longer than positional table"
    # v7x has 2 TensorCores/chip: shard the batch across cores via a parallel
    # grid (one batch element per core).  On 1-TC chips keep a single grid step
    # (a grid there is pure per-step overhead).
    bb = 1 if (_tensorcores_per_chip() >= 2 and B > 1) else B
    return _forward_impl(src, params, nheads=nheads, num_layers=num_layers,
                         batch_block=bb)


# ---------------------------------------------------------------------------
# Main
# ---------------------------------------------------------------------------

if __name__ == "__main__":
    S, B = 8, 2            # sequence length, batch
    input_dim = 32         # d_model
    hidden_dim = 64        # FFN hidden dim
    nheads = 4
    num_layers = 2

    key = jax.random.PRNGKey(0)
    k_param, k_data = jax.random.split(key)

    params = init_params(k_param, input_dim, hidden_dim, nheads, num_layers)
    src = jax.random.normal(k_data, (S, B, 4), dtype=jnp.float32)

    out = forward(src, params, nheads, num_layers)
    out = jax.block_until_ready(out)
    assert out.shape == (S, B, input_dim)
    assert jnp.all(jnp.isfinite(out))
    print("KERNEL_OK")
</pallas_src>

<mosaic_0001>
module attributes {stable_mosaic.version = 11 : i64} {
  func.func @_fused_encoder_kernel(%arg0: i32, %arg1: memref<16x4xf32, #tpu.memory_space<vmem>>, %arg2: memref<8x32xf32, #tpu.memory_space<vmem>>, %arg3: memref<4x32xf32, #tpu.memory_space<vmem>>, %arg4: memref<2x32x96xf32, #tpu.memory_space<vmem>>, %arg5: memref<2x1x96xf32, #tpu.memory_space<vmem>>, %arg6: memref<2x32x32xf32, #tpu.memory_space<vmem>>, %arg7: memref<2x1x32xf32, #tpu.memory_space<vmem>>, %arg8: memref<2x1x32xf32, #tpu.memory_space<vmem>>, %arg9: memref<2x1x32xf32, #tpu.memory_space<vmem>>, %arg10: memref<2x32x64xf32, #tpu.memory_space<vmem>>, %arg11: memref<2x1x64xf32, #tpu.memory_space<vmem>>, %arg12: memref<2x64x32xf32, #tpu.memory_space<vmem>>, %arg13: memref<2x1x32xf32, #tpu.memory_space<vmem>>, %arg14: memref<2x1x32xf32, #tpu.memory_space<vmem>>, %arg15: memref<2x1x32xf32, #tpu.memory_space<vmem>>, %arg16: memref<16x64xf32, #tpu.memory_space<vmem>>, %arg17: memref<64x32xf32, #tpu.memory_space<vmem>>, %arg18: memref<16x32xf32, #tpu.memory_space<vmem>>) attributes {dimension_semantics = [#tpu.dimension_semantics<parallel>], iteration_bounds = array<i64: 1>, scalar_prefetch = 0 : i64, scratch_operands = 0 : i64, tpu.core_type = #tpu.core_type<tc>, window_params = [{transform_indices = @transform_0, window_bounds = array<i64: 16, 4>}, {pipeline_mode = #tpu.pipeline_mode<synchronous>, transform_indices = @transform_1, window_bounds = array<i64: 8, 32>}, {pipeline_mode = #tpu.pipeline_mode<synchronous>, transform_indices = @transform_2, window_bounds = array<i64: 4, 32>}, {pipeline_mode = #tpu.pipeline_mode<synchronous>, transform_indices = @transform_3, window_bounds = array<i64: 2, 32, 96>}, {pipeline_mode = #tpu.pipeline_mode<synchronous>, transform_indices = @transform_4, window_bounds = array<i64: 2, 1, 96>}, {pipeline_mode = #tpu.pipeline_mode<synchronous>, transform_indices = @transform_5, window_bounds = array<i64: 2, 32, 32>}, {pipeline_mode = #tpu.pipeline_mode<synchronous>, transform_indices = @transform_6, window_bounds = array<i64: 2, 1, 32>}, {pipeline_mode = #tpu.pipeline_mode<synchronous>, transform_indices = @transform_7, window_bounds = array<i64: 2, 1, 32>}, {pipeline_mode = #tpu.pipeline_mode<synchronous>, transform_indices = @transform_8, window_bounds = array<i64: 2, 1, 32>}, {pipeline_mode = #tpu.pipeline_mode<synchronous>, transform_indices = @transform_9, window_bounds = array<i64: 2, 32, 64>}, {pipeline_mode = #tpu.pipeline_mode<synchronous>, transform_indices = @transform_10, window_bounds = array<i64: 2, 1, 64>}, {pipeline_mode = #tpu.pipeline_mode<synchronous>, transform_indices = @transform_11, window_bounds = array<i64: 2, 64, 32>}, {pipeline_mode = #tpu.pipeline_mode<synchronous>, transform_indices = @transform_12, window_bounds = array<i64: 2, 1, 32>}, {pipeline_mode = #tpu.pipeline_mode<synchronous>, transform_indices = @transform_13, window_bounds = array<i64: 2, 1, 32>}, {pipeline_mode = #tpu.pipeline_mode<synchronous>, transform_indices = @transform_14, window_bounds = array<i64: 2, 1, 32>}, {pipeline_mode = #tpu.pipeline_mode<synchronous>, transform_indices = @transform_15, window_bounds = array<i64: 16, 64>}, {pipeline_mode = #tpu.pipeline_mode<synchronous>, transform_indices = @transform_16, window_bounds = array<i64: 64, 32>}, {transform_indices = @transform_17, window_bounds = array<i64: 16, 32>}]} {
    %c0 = arith.constant 0 : index
    %c0_0 = arith.constant 0 : index
    %0 = vector.load %arg1[%c0, %c0_0] : memref<16x4xf32, #tpu.memory_space<vmem>>, vector<16x4xf32>
    %c0_1 = arith.constant 0 : index
    %c0_2 = arith.constant 0 : index
    %1 = vector.load %arg3[%c0_1, %c0_2] : memref<4x32xf32, #tpu.memory_space<vmem>>, vector<4x32xf32>
    %2 = vector.extract_strided_slice %0 {offsets = [0, 0], sizes = [16, 1], strides = [1, 1]} : vector<16x4xf32> to vector<16x1xf32>
    %3 = vector.extract_strided_slice %1 {offsets = [0, 0], sizes = [1, 32], strides = [1, 1]} : vector<4x32xf32> to vector<1x32xf32>
    %4 = vector.broadcast %2 : vector<16x1xf32> to vector<16x32xf32>
    %5 = vector.broadcast %3 : vector<1x32xf32> to vector<16x32xf32>
    %6 = arith.mulf %4, %5 : vector<16x32xf32>
    %7 = vector.extract_strided_slice %0 {offsets = [0, 1], sizes = [16, 1], strides = [1, 1]} : vector<16x4xf32> to vector<16x1xf32>
    %8 = vector.extract_strided_slice %1 {offsets = [1, 0], sizes = [1, 32], strides = [1, 1]} : vector<4x32xf32> to vector<1x32xf32>
    %9 = vector.broadcast %7 : vector<16x1xf32> to vector<16x32xf32>
    %10 = vector.broadcast %8 : vector<1x32xf32> to vector<16x32xf32>
    %11 = arith.mulf %9, %10 : vector<16x32xf32>
    %12 = arith.addf %6, %11 : vector<16x32xf32>
    %13 = vector.extract_strided_slice %0 {offsets = [0, 2], sizes = [16, 1], strides = [1, 1]} : vector<16x4xf32> to vector<16x1xf32>
    %14 = vector.extract_strided_slice %1 {offsets = [2, 0], sizes = [1, 32], strides = [1, 1]} : vector<4x32xf32> to vector<1x32xf32>
    %15 = vector.broadcast %13 : vector<16x1xf32> to vector<16x32xf32>
    %16 = vector.broadcast %14 : vector<1x32xf32> to vector<16x32xf32>
    %17 = arith.mulf %15, %16 : vector<16x32xf32>
    %18 = arith.addf %12, %17 : vector<16x32xf32>
    %19 = vector.extract_strided_slice %0 {offsets = [0, 3], sizes = [16, 1], strides = [1, 1]} : vector<16x4xf32> to vector<16x1xf32>
    %20 = vector.extract_strided_slice %1 {offsets = [3, 0], sizes = [1, 32], strides = [1, 1]} : vector<4x32xf32> to vector<1x32xf32>
    %21 = vector.broadcast %19 : vector<16x1xf32> to vector<16x32xf32>
    %22 = vector.broadcast %20 : vector<1x32xf32> to vector<16x32xf32>
    %23 = arith.mulf %21, %22 : vector<16x32xf32>
    %24 = arith.addf %18, %23 : vector<16x32xf32>
    %c0_3 = arith.constant 0 : index
    %c0_4 = arith.constant 0 : index
    %25 = vector.load %arg2[%c0_3, %c0_4] : memref<8x32xf32, #tpu.memory_space<vmem>>, vector<8x32xf32>
    %26 = tpu.concatenate %25, %25 in 0 : vector<8x32xf32>, vector<8x32xf32> -> vector<16x32xf32>
    %27 = arith.addf %24, %26 : vector<16x32xf32>
    %c0_5 = arith.constant 0 : index
    %c0_6 = arith.constant 0 : index
    %28 = vector.load %arg16[%c0_5, %c0_6] : memref<16x64xf32, #tpu.memory_space<vmem>>, vector<16x64xf32>
    %c0_7 = arith.constant 0 : index
    %c0_8 = arith.constant 0 : index
    %29 = vector.load %arg17[%c0_7, %c0_8] : memref<64x32xf32, #tpu.memory_space<vmem>>, vector<64x32xf32>
    %c0_9 = arith.constant 0 : index
    %c0_10 = arith.constant 0 : index
    %c0_11 = arith.constant 0 : index
    %30 = vector.load %arg4[%c0_9, %c0_10, %c0_11] : memref<2x32x96xf32, #tpu.memory_space<vmem>>, vector<1x32x96xf32>
    %31 = vector.shape_cast %30 : vector<1x32x96xf32> to vector<32x96xf32>
    %cst = arith.constant dense<0.000000e+00> : vector<16x96xf32>
    %32 = tpu.matmul %27, %31, %cst {dimension_numbers = #tpu.dot_dimension_numbers<[1], [0], [0], [1], [0, 0, 1, 1], [], []>} : vector<16x32xf32>, vector<32x96xf32>, vector<16x96xf32> -> vector<16x96xf32>
    %c0_12 = arith.constant 0 : index
    %c0_13 = arith.constant 0 : index
    %c0_14 = arith.constant 0 : index
    %33 = vector.load %arg5[%c0_12, %c0_13, %c0_14] : memref<2x1x96xf32, #tpu.memory_space<vmem>>, vector<1x1x96xf32>
    %34 = vector.shape_cast %33 : vector<1x1x96xf32> to vector<1x96xf32>
    %35 = vector.broadcast %34 : vector<1x96xf32> to vector<16x96xf32>
    %36 = arith.addf %32, %35 : vector<16x96xf32>
    %37 = vector.extract_strided_slice %36 {offsets = [0, 0], sizes = [16, 32], strides = [1, 1]} : vector<16x96xf32> to vector<16x32xf32>
    %38 = vector.extract_strided_slice %36 {offsets = [0, 32], sizes = [16, 32], strides = [1, 1]} : vector<16x96xf32> to vector<16x32xf32>
    %39 = vector.extract_strided_slice %36 {offsets = [0, 64], sizes = [16, 32], strides = [1, 1]} : vector<16x96xf32> to vector<16x32xf32>
    %40 = tpu.concatenate %38, %38, %38, %38 in 0 : vector<16x32xf32>, vector<16x32xf32>, vector<16x32xf32>, vector<16x32xf32> -> vector<64x32xf32>
    %41 = arith.mulf %40, %29 : vector<64x32xf32>
    %42 = tpu.concatenate %39, %39, %39, %39 in 0 : vector<16x32xf32>, vector<16x32xf32>, vector<16x32xf32>, vector<16x32xf32> -> vector<64x32xf32>
    %43 = arith.mulf %42, %29 : vector<64x32xf32>
    "tpu.trace_start"() <{level = 10 : i32, message = "id,jd->ij"}> : () -> ()
    %cst_15 = arith.constant dense<0.000000e+00> : vector<16x64xf32>
    %44 = tpu.matmul %37, %41, %cst_15 {dimension_numbers = #tpu.dot_dimension_numbers<[1], [1], [0], [0], [0, 0, 1, 0], [], []>} : vector<16x32xf32>, vector<64x32xf32>, vector<16x64xf32> -> vector<16x64xf32>
    "tpu.trace_stop"() : () -> ()
    %cst_16 = arith.constant 0.353553385 : f32
    %45 = vector.broadcast %cst_16 : f32 to vector<16x64xf32>
    %46 = arith.mulf %44, %45 : vector<16x64xf32>
    %47 = arith.addf %46, %28 : vector<16x64xf32>
    %cst_17 = arith.constant dense<0xFF800000> : vector<16xf32>
    %48 = vector.multi_reduction <maximumf>, %47, %cst_17 [1] : vector<16x64xf32> to vector<16xf32>
    %49 = vector.shape_cast %48 : vector<16xf32> to vector<16x1xf32>
    %50 = vector.broadcast %49 : vector<16x1xf32> to vector<16x64xf32>
    %51 = arith.subf %47, %50 : vector<16x64xf32>
    %52 = math.exp %51 : vector<16x64xf32>
    %cst_18 = arith.constant dense<0.000000e+00> : vector<16x32xf32>
    %53 = tpu.matmul %52, %43, %cst_18 {dimension_numbers = #tpu.dot_dimension_numbers<[1], [0], [0], [1], [0, 0, 1, 1], [], []>} : vector<16x64xf32>, vector<64x32xf32>, vector<16x32xf32> -> vector<16x32xf32>
    %cst_19 = arith.constant dense<0.000000e+00> : vector<16x32xf32>
    %54 = tpu.matmul %52, %29, %cst_19 {dimension_numbers = #tpu.dot_dimension_numbers<[1], [0], [0], [1], [0, 0, 1, 1], [], []>} : vector<16x64xf32>, vector<64x32xf32>, vector<16x32xf32> -> vector<16x32xf32>
    %55 = tpu.reciprocal %54 {approx = true} : vector<16x32xf32> -> vector<16x32xf32>
    %56 = arith.mulf %53, %55 : vector<16x32xf32>
    %c0_20 = arith.constant 0 : index
    %c0_21 = arith.constant 0 : index
    %c0_22 = arith.constant 0 : index
    %57 = vector.load %arg6[%c0_20, %c0_21, %c0_22] : memref<2x32x32xf32, #tpu.memory_space<vmem>>, vector<1x32x32xf32>
    %58 = vector.shape_cast %57 : vector<1x32x32xf32> to vector<32x32xf32>
    %cst_23 = arith.constant dense<0.000000e+00> : vector<16x32xf32>
    %59 = tpu.matmul %56, %58, %cst_23 {dimension_numbers = #tpu.dot_dimension_numbers<[1], [0], [0], [1], [0, 0, 1, 1], [], []>} : vector<16x32xf32>, vector<32x32xf32>, vector<16x32xf32> -> vector<16x32xf32>
    %c0_24 = arith.constant 0 : index
    %c0_25 = arith.constant 0 : index
    %c0_26 = arith.constant 0 : index
    %60 = vector.load %arg7[%c0_24, %c0_25, %c0_26] : memref<2x1x32xf32, #tpu.memory_space<vmem>>, vector<1x1x32xf32>
    %61 = vector.shape_cast %60 : vector<1x1x32xf32> to vector<1x32xf32>
    %62 = vector.broadcast %61 : vector<1x32xf32> to vector<16x32xf32>
    %63 = arith.addf %59, %62 : vector<16x32xf32>
    %64 = arith.addf %27, %63 : vector<16x32xf32>
    %c0_27 = arith.constant 0 : index
    %c0_28 = arith.constant 0 : index
    %c0_29 = arith.constant 0 : index
    %65 = vector.load %arg8[%c0_27, %c0_28, %c0_29] : memref<2x1x32xf32, #tpu.memory_space<vmem>>, vector<1x1x32xf32>
    %66 = vector.shape_cast %65 : vector<1x1x32xf32> to vector<1x32xf32>
    %c0_30 = arith.constant 0 : index
    %c0_31 = arith.constant 0 : index
    %c0_32 = arith.constant 0 : index
    %67 = vector.load %arg9[%c0_30, %c0_31, %c0_32] : memref<2x1x32xf32, #tpu.memory_space<vmem>>, vector<1x1x32xf32>
    %68 = vector.shape_cast %67 : vector<1x1x32xf32> to vector<1x32xf32>
    %cst_33 = arith.constant dense<0.000000e+00> : vector<16xf32>
    %69 = vector.multi_reduction <add>, %64, %cst_33 [1] : vector<16x32xf32> to vector<16xf32>
    %70 = vector.shape_cast %69 : vector<16xf32> to vector<16x1xf32>
    %cst_34 = arith.constant 3.200000e+01 : f32
    %71 = vector.broadcast %cst_34 : f32 to vector<16x1xf32>
    %72 = arith.divf %70, %71 : vector<16x1xf32>
    %73 = vector.broadcast %72 : vector<16x1xf32> to vector<16x32xf32>
    %74 = arith.subf %64, %73 : vector<16x32xf32>
    %75 = arith.mulf %74, %74 : vector<16x32xf32>
    %cst_35 = arith.constant dense<0.000000e+00> : vector<16xf32>
    %76 = vector.multi_reduction <add>, %75, %cst_35 [1] : vector<16x32xf32> to vector<16xf32>
    %77 = vector.shape_cast %76 : vector<16xf32> to vector<16x1xf32>
    %cst_36 = arith.constant 3.200000e+01 : f32
    %78 = vector.broadcast %cst_36 : f32 to vector<16x1xf32>
    %79 = arith.divf %77, %78 : vector<16x1xf32>
    %80 = vector.broadcast %72 : vector<16x1xf32> to vector<16x32xf32>
    %81 = arith.subf %64, %80 : vector<16x32xf32>
    %cst_37 = arith.constant 9.99999974E-6 : f32
    %82 = vector.broadcast %cst_37 : f32 to vector<16x1xf32>
    %83 = arith.addf %79, %82 : vector<16x1xf32>
    %84 = math.rsqrt %83 : vector<16x1xf32>
    %85 = vector.broadcast %84 : vector<16x1xf32> to vector<16x32xf32>
    %86 = arith.mulf %81, %85 : vector<16x32xf32>
    %87 = vector.broadcast %66 : vector<1x32xf32> to vector<16x32xf32>
    %88 = arith.mulf %86, %87 : vector<16x32xf32>
    %89 = vector.broadcast %68 : vector<1x32xf32> to vector<16x32xf32>
    %90 = arith.addf %88, %89 : vector<16x32xf32>
    %c0_38 = arith.constant 0 : index
    %c0_39 = arith.constant 0 : index
    %c0_40 = arith.constant 0 : index
    %91 = vector.load %arg10[%c0_38, %c0_39, %c0_40] : memref<2x32x64xf32, #tpu.memory_space<vmem>>, vector<1x32x64xf32>
    %92 = vector.shape_cast %91 : vector<1x32x64xf32> to vector<32x64xf32>
    %cst_41 = arith.constant dense<0.000000e+00> : vector<16x64xf32>
    %93 = tpu.matmul %90, %92, %cst_41 {dimension_numbers = #tpu.dot_dimension_numbers<[1], [0], [0], [1], [0, 0, 1, 1], [], []>} : vector<16x32xf32>, vector<32x64xf32>, vector<16x64xf32> -> vector<16x64xf32>
    %c0_42 = arith.constant 0 : index
    %c0_43 = arith.constant 0 : index
    %c0_44 = arith.constant 0 : index
    %94 = vector.load %arg11[%c0_42, %c0_43, %c0_44] : memref<2x1x64xf32, #tpu.memory_space<vmem>>, vector<1x1x64xf32>
    %95 = vector.shape_cast %94 : vector<1x1x64xf32> to vector<1x64xf32>
    %96 = vector.broadcast %95 : vector<1x64xf32> to vector<16x64xf32>
    %97 = arith.addf %93, %96 : vector<16x64xf32>
    %cst_45 = arith.constant 0.000000e+00 : f32
    %98 = vector.broadcast %cst_45 : f32 to vector<16x64xf32>
    %99 = arith.maximumf %97, %98 : vector<16x64xf32>
    %c0_46 = arith.constant 0 : index
    %c0_47 = arith.constant 0 : index
    %c0_48 = arith.constant 0 : index
    %100 = vector.load %arg12[%c0_46, %c0_47, %c0_48] : memref<2x64x32xf32, #tpu.memory_space<vmem>>, vector<1x64x32xf32>
    %101 = vector.shape_cast %100 : vector<1x64x32xf32> to vector<64x32xf32>
    %cst_49 = arith.constant dense<0.000000e+00> : vector<16x32xf32>
    %102 = tpu.matmul %99, %101, %cst_49 {dimension_numbers = #tpu.dot_dimension_numbers<[1], [0], [0], [1], [0, 0, 1, 1], [], []>} : vector<16x64xf32>, vector<64x32xf32>, vector<16x32xf32> -> vector<16x32xf32>
    %c0_50 = arith.constant 0 : index
    %c0_51 = arith.constant 0 : index
    %c0_52 = arith.constant 0 : index
    %103 = vector.load %arg13[%c0_50, %c0_51, %c0_52] : memref<2x1x32xf32, #tpu.memory_space<vmem>>, vector<1x1x32xf32>
    %104 = vector.shape_cast %103 : vector<1x1x32xf32> to vector<1x32xf32>
    %105 = vector.broadcast %104 : vector<1x32xf32> to vector<16x32xf32>
    %106 = arith.addf %102, %105 : vector<16x32xf32>
    %107 = arith.addf %90, %106 : vector<16x32xf32>
    %c0_53 = arith.constant 0 : index
    %c0_54 = arith.constant 0 : index
    %c0_55 = arith.constant 0 : index
    %108 = vector.load %arg14[%c0_53, %c0_54, %c0_55] : memref<2x1x32xf32, #tpu.memory_space<vmem>>, vector<1x1x32xf32>
    %109 = vector.shape_cast %108 : vector<1x1x32xf32> to vector<1x32xf32>
    %c0_56 = arith.constant 0 : index
    %c0_57 = arith.constant 0 : index
    %c0_58 = arith.constant 0 : index
    %110 = vector.load %arg15[%c0_56, %c0_57, %c0_58] : memref<2x1x32xf32, #tpu.memory_space<vmem>>, vector<1x1x32xf32>
    %111 = vector.shape_cast %110 : vector<1x1x32xf32> to vector<1x32xf32>
    %cst_59 = arith.constant dense<0.000000e+00> : vector<16xf32>
    %112 = vector.multi_reduction <add>, %107, %cst_59 [1] : vector<16x32xf32> to vector<16xf32>
    %113 = vector.shape_cast %112 : vector<16xf32> to vector<16x1xf32>
    %cst_60 = arith.constant 3.200000e+01 : f32
    %114 = vector.broadcast %cst_60 : f32 to vector<16x1xf32>
    %115 = arith.divf %113, %114 : vector<16x1xf32>
    %116 = vector.broadcast %115 : vector<16x1xf32> to vector<16x32xf32>
    %117 = arith.subf %107, %116 : vector<16x32xf32>
    %118 = arith.mulf %117, %117 : vector<16x32xf32>
    %cst_61 = arith.constant dense<0.000000e+00> : vector<16xf32>
    %119 = vector.multi_reduction <add>, %118, %cst_61 [1] : vector<16x32xf32> to vector<16xf32>
    %120 = vector.shape_cast %119 : vector<16xf32> to vector<16x1xf32>
    %cst_62 = arith.constant 3.200000e+01 : f32
    %121 = vector.broadcast %cst_62 : f32 to vector<16x1xf32>
    %122 = arith.divf %120, %121 : vector<16x1xf32>
    %123 = vector.broadcast %115 : vector<16x1xf32> to vector<16x32xf32>
    %124 = arith.subf %107, %123 : vector<16x32xf32>
    %cst_63 = arith.constant 9.99999974E-6 : f32
    %125 = vector.broadcast %cst_63 : f32 to vector<16x1xf32>
    %126 = arith.addf %122, %125 : vector<16x1xf32>
    %127 = math.rsqrt %126 : vector<16x1xf32>
    %128 = vector.broadcast %127 : vector<16x1xf32> to vector<16x32xf32>
    %129 = arith.mulf %124, %128 : vector<16x32xf32>
    %130 = vector.broadcast %109 : vector<1x32xf32> to vector<16x32xf32>
    %131 = arith.mulf %129, %130 : vector<16x32xf32>
    %132 = vector.broadcast %111 : vector<1x32xf32> to vector<16x32xf32>
    %133 = arith.addf %131, %132 : vector<16x32xf32>
    %c1 = arith.constant 1 : index
    %c0_64 = arith.constant 0 : index
    %c0_65 = arith.constant 0 : index
    %134 = vector.load %arg4[%c1, %c0_64, %c0_65] : memref<2x32x96xf32, #tpu.memory_space<vmem>>, vector<1x32x96xf32>
    %135 = vector.shape_cast %134 : vector<1x32x96xf32> to vector<32x96xf32>
    %cst_66 = arith.constant dense<0.000000e+00> : vector<16x96xf32>
    %136 = tpu.matmul %133, %135, %cst_66 {dimension_numbers = #tpu.dot_dimension_numbers<[1], [0], [0], [1], [0, 0, 1, 1], [], []>} : vector<16x32xf32>, vector<32x96xf32>, vector<16x96xf32> -> vector<16x96xf32>
    %c1_67 = arith.constant 1 : index
    %c0_68 = arith.constant 0 : index
    %c0_69 = arith.constant 0 : index
    %137 = vector.load %arg5[%c1_67, %c0_68, %c0_69] : memref<2x1x96xf32, #tpu.memory_space<vmem>>, vector<1x1x96xf32>
    %138 = vector.shape_cast %137 : vector<1x1x96xf32> to vector<1x96xf32>
    %139 = vector.broadcast %138 : vector<1x96xf32> to vector<16x96xf32>
    %140 = arith.addf %136, %139 : vector<16x96xf32>
    %141 = vector.extract_strided_slice %140 {offsets = [0, 0], sizes = [16, 32], strides = [1, 1]} : vector<16x96xf32> to vector<16x32xf32>
    %142 = vector.extract_strided_slice %140 {offsets = [0, 32], sizes = [16, 32], strides = [1, 1]} : vector<16x96xf32> to vector<16x32xf32>
    %143 = vector.extract_strided_slice %140 {offsets = [0, 64], sizes = [16, 32], strides = [1, 1]} : vector<16x96xf32> to vector<16x32xf32>
    %144 = tpu.concatenate %142, %142, %142, %142 in 0 : vector<16x32xf32>, vector<16x32xf32>, vector<16x32xf32>, vector<16x32xf32> -> vector<64x32xf32>
    %145 = arith.mulf %144, %29 : vector<64x32xf32>
    %146 = tpu.concatenate %143, %143, %143, %143 in 0 : vector<16x32xf32>, vector<16x32xf32>, vector<16x32xf32>, vector<16x32xf32> -> vector<64x32xf32>
    %147 = arith.mulf %146, %29 : vector<64x32xf32>
    "tpu.trace_start"() <{level = 10 : i32, message = "id,jd->ij"}> : () -> ()
    %cst_70 = arith.constant dense<0.000000e+00> : vector<16x64xf32>
    %148 = tpu.matmul %141, %145, %cst_70 {dimension_numbers = #tpu.dot_dimension_numbers<[1], [1], [0], [0], [0, 0, 1, 0], [], []>} : vector<16x32xf32>, vector<64x32xf32>, vector<16x64xf32> -> vector<16x64xf32>
    "tpu.trace_stop"() : () -> ()
    %cst_71 = arith.constant 0.353553385 : f32
    %149 = vector.broadcast %cst_71 : f32 to vector<16x64xf32>
    %150 = arith.mulf %148, %149 : vector<16x64xf32>
    %151 = arith.addf %150, %28 : vector<16x64xf32>
    %cst_72 = arith.constant dense<0xFF800000> : vector<16xf32>
    %152 = vector.multi_reduction <maximumf>, %151, %cst_72 [1] : vector<16x64xf32> to vector<16xf32>
    %153 = vector.shape_cast %152 : vector<16xf32> to vector<16x1xf32>
    %154 = vector.broadcast %153 : vector<16x1xf32> to vector<16x64xf32>
    %155 = arith.subf %151, %154 : vector<16x64xf32>
    %156 = math.exp %155 : vector<16x64xf32>
    %cst_73 = arith.constant dense<0.000000e+00> : vector<16x32xf32>
    %157 = tpu.matmul %156, %147, %cst_73 {dimension_numbers = #tpu.dot_dimension_numbers<[1], [0], [0], [1], [0, 0, 1, 1], [], []>} : vector<16x64xf32>, vector<64x32xf32>, vector<16x32xf32> -> vector<16x32xf32>
    %cst_74 = arith.constant dense<0.000000e+00> : vector<16x32xf32>
    %158 = tpu.matmul %156, %29, %cst_74 {dimension_numbers = #tpu.dot_dimension_numbers<[1], [0], [0], [1], [0, 0, 1, 1], [], []>} : vector<16x64xf32>, vector<64x32xf32>, vector<16x32xf32> -> vector<16x32xf32>
    %159 = tpu.reciprocal %158 {approx = true} : vector<16x32xf32> -> vector<16x32xf32>
    %160 = arith.mulf %157, %159 : vector<16x32xf32>
    %c1_75 = arith.constant 1 : index
    %c0_76 = arith.constant 0 : index
    %c0_77 = arith.constant 0 : index
    %161 = vector.load %arg6[%c1_75, %c0_76, %c0_77] : memref<2x32x32xf32, #tpu.memory_space<vmem>>, vector<1x32x32xf32>
    %162 = vector.shape_cast %161 : vector<1x32x32xf32> to vector<32x32xf32>
    %cst_78 = arith.constant dense<0.000000e+00> : vector<16x32xf32>
    %163 = tpu.matmul %160, %162, %cst_78 {dimension_numbers = #tpu.dot_dimension_numbers<[1], [0], [0], [1], [0, 0, 1, 1], [], []>} : vector<16x32xf32>, vector<32x32xf32>, vector<16x32xf32> -> vector<16x32xf32>
    %c1_79 = arith.constant 1 : index
    %c0_80 = arith.constant 0 : index
    %c0_81 = arith.constant 0 : index
    %164 = vector.load %arg7[%c1_79, %c0_80, %c0_81] : memref<2x1x32xf32, #tpu.memory_space<vmem>>, vector<1x1x32xf32>
    %165 = vector.shape_cast %164 : vector<1x1x32xf32> to vector<1x32xf32>
    %166 = vector.broadcast %165 : vector<1x32xf32> to vector<16x32xf32>
    %167 = arith.addf %163, %166 : vector<16x32xf32>
    %168 = arith.addf %133, %167 : vector<16x32xf32>
    %c1_82 = arith.constant 1 : index
    %c0_83 = arith.constant 0 : index
    %c0_84 = arith.constant 0 : index
    %169 = vector.load %arg8[%c1_82, %c0_83, %c0_84] : memref<2x1x32xf32, #tpu.memory_space<vmem>>, vector<1x1x32xf32>
    %170 = vector.shape_cast %169 : vector<1x1x32xf32> to vector<1x32xf32>
    %c1_85 = arith.constant 1 : index
    %c0_86 = arith.constant 0 : index
    %c0_87 = arith.constant 0 : index
    %171 = vector.load %arg9[%c1_85, %c0_86, %c0_87] : memref<2x1x32xf32, #tpu.memory_space<vmem>>, vector<1x1x32xf32>
    %172 = vector.shape_cast %171 : vector<1x1x32xf32> to vector<1x32xf32>
    %cst_88 = arith.constant dense<0.000000e+00> : vector<16xf32>
    %173 = vector.multi_reduction <add>, %168, %cst_88 [1] : vector<16x32xf32> to vector<16xf32>
    %174 = vector.shape_cast %173 : vector<16xf32> to vector<16x1xf32>
    %cst_89 = arith.constant 3.200000e+01 : f32
    %175 = vector.broadcast %cst_89 : f32 to vector<16x1xf32>
    %176 = arith.divf %174, %175 : vector<16x1xf32>
    %177 = vector.broadcast %176 : vector<16x1xf32> to vector<16x32xf32>
    %178 = arith.subf %168, %177 : vector<16x32xf32>
    %179 = arith.mulf %178, %178 : vector<16x32xf32>
    %cst_90 = arith.constant dense<0.000000e+00> : vector<16xf32>
    %180 = vector.multi_reduction <add>, %179, %cst_90 [1] : vector<16x32xf32> to vector<16xf32>
    %181 = vector.shape_cast %180 : vector<16xf32> to vector<16x1xf32>
    %cst_91 = arith.constant 3.200000e+01 : f32
    %182 = vector.broadcast %cst_91 : f32 to vector<16x1xf32>
    %183 = arith.divf %181, %182 : vector<16x1xf32>
    %184 = vector.broadcast %176 : vector<16x1xf32> to vector<16x32xf32>
    %185 = arith.subf %168, %184 : vector<16x32xf32>
    %cst_92 = arith.constant 9.99999974E-6 : f32
    %186 = vector.broadcast %cst_92 : f32 to vector<16x1xf32>
    %187 = arith.addf %183, %186 : vector<16x1xf32>
    %188 = math.rsqrt %187 : vector<16x1xf32>
    %189 = vector.broadcast %188 : vector<16x1xf32> to vector<16x32xf32>
    %190 = arith.mulf %185, %189 : vector<16x32xf32>
    %191 = vector.broadcast %170 : vector<1x32xf32> to vector<16x32xf32>
    %192 = arith.mulf %190, %191 : vector<16x32xf32>
    %193 = vector.broadcast %172 : vector<1x32xf32> to vector<16x32xf32>
    %194 = arith.addf %192, %193 : vector<16x32xf32>
    %c1_93 = arith.constant 1 : index
    %c0_94 = arith.constant 0 : index
    %c0_95 = arith.constant 0 : index
    %195 = vector.load %arg10[%c1_93, %c0_94, %c0_95] : memref<2x32x64xf32, #tpu.memory_space<vmem>>, vector<1x32x64xf32>
    %196 = vector.shape_cast %195 : vector<1x32x64xf32> to vector<32x64xf32>
    %cst_96 = arith.constant dense<0.000000e+00> : vector<16x64xf32>
    %197 = tpu.matmul %194, %196, %cst_96 {dimension_numbers = #tpu.dot_dimension_numbers<[1], [0], [0], [1], [0, 0, 1, 1], [], []>} : vector<16x32xf32>, vector<32x64xf32>, vector<16x64xf32> -> vector<16x64xf32>
    %c1_97 = arith.constant 1 : index
    %c0_98 = arith.constant 0 : index
    %c0_99 = arith.constant 0 : index
    %198 = vector.load %arg11[%c1_97, %c0_98, %c0_99] : memref<2x1x64xf32, #tpu.memory_space<vmem>>, vector<1x1x64xf32>
    %199 = vector.shape_cast %198 : vector<1x1x64xf32> to vector<1x64xf32>
    %200 = vector.broadcast %199 : vector<1x64xf32> to vector<16x64xf32>
    %201 = arith.addf %197, %200 : vector<16x64xf32>
    %cst_100 = arith.constant 0.000000e+00 : f32
    %202 = vector.broadcast %cst_100 : f32 to vector<16x64xf32>
    %203 = arith.maximumf %201, %202 : vector<16x64xf32>
    %c1_101 = arith.constant 1 : index
    %c0_102 = arith.constant 0 : index
    %c0_103 = arith.constant 0 : index
    %204 = vector.load %arg12[%c1_101, %c0_102, %c0_103] : memref<2x64x32xf32, #tpu.memory_space<vmem>>, vector<1x64x32xf32>
    %205 = vector.shape_cast %204 : vector<1x64x32xf32> to vector<64x32xf32>
    %cst_104 = arith.constant dense<0.000000e+00> : vector<16x32xf32>
    %206 = tpu.matmul %203, %205, %cst_104 {dimension_numbers = #tpu.dot_dimension_numbers<[1], [0], [0], [1], [0, 0, 1, 1], [], []>} : vector<16x64xf32>, vector<64x32xf32>, vector<16x32xf32> -> vector<16x32xf32>
    %c1_105 = arith.constant 1 : index
    %c0_106 = arith.constant 0 : index
    %c0_107 = arith.constant 0 : index
    %207 = vector.load %arg13[%c1_105, %c0_106, %c0_107] : memref<2x1x32xf32, #tpu.memory_space<vmem>>, vector<1x1x32xf32>
    %208 = vector.shape_cast %207 : vector<1x1x32xf32> to vector<1x32xf32>
    %209 = vector.broadcast %208 : vector<1x32xf32> to vector<16x32xf32>
    %210 = arith.addf %206, %209 : vector<16x32xf32>
    %211 = arith.addf %194, %210 : vector<16x32xf32>
    %c1_108 = arith.constant 1 : index
    %c0_109 = arith.constant 0 : index
    %c0_110 = arith.constant 0 : index
    %212 = vector.load %arg14[%c1_108, %c0_109, %c0_110] : memref<2x1x32xf32, #tpu.memory_space<vmem>>, vector<1x1x32xf32>
    %213 = vector.shape_cast %212 : vector<1x1x32xf32> to vector<1x32xf32>
    %c1_111 = arith.constant 1 : index
    %c0_112 = arith.constant 0 : index
    %c0_113 = arith.constant 0 : index
    %214 = vector.load %arg15[%c1_111, %c0_112, %c0_113] : memref<2x1x32xf32, #tpu.memory_space<vmem>>, vector<1x1x32xf32>
    %215 = vector.shape_cast %214 : vector<1x1x32xf32> to vector<1x32xf32>
    %cst_114 = arith.constant dense<0.000000e+00> : vector<16xf32>
    %216 = vector.multi_reduction <add>, %211, %cst_114 [1] : vector<16x32xf32> to vector<16xf32>
    %217 = vector.shape_cast %216 : vector<16xf32> to vector<16x1xf32>
    %cst_115 = arith.constant 3.200000e+01 : f32
    %218 = vector.broadcast %cst_115 : f32 to vector<16x1xf32>
    %219 = arith.divf %217, %218 : vector<16x1xf32>
    %220 = vector.broadcast %219 : vector<16x1xf32> to vector<16x32xf32>
    %221 = arith.subf %211, %220 : vector<16x32xf32>
    %222 = arith.mulf %221, %221 : vector<16x32xf32>
    %cst_116 = arith.constant dense<0.000000e+00> : vector<16xf32>
    %223 = vector.multi_reduction <add>, %222, %cst_116 [1] : vector<16x32xf32> to vector<16xf32>
    %224 = vector.shape_cast %223 : vector<16xf32> to vector<16x1xf32>
    %cst_117 = arith.constant 3.200000e+01 : f32
    %225 = vector.broadcast %cst_117 : f32 to vector<16x1xf32>
    %226 = arith.divf %224, %225 : vector<16x1xf32>
    %227 = vector.broadcast %219 : vector<16x1xf32> to vector<16x32xf32>
    %228 = arith.subf %211, %227 : vector<16x32xf32>
    %cst_118 = arith.constant 9.99999974E-6 : f32
    %229 = vector.broadcast %cst_118 : f32 to vector<16x1xf32>
    %230 = arith.addf %226, %229 : vector<16x1xf32>
    %231 = math.rsqrt %230 : vector<16x1xf32>
    %232 = vector.broadcast %231 : vector<16x1xf32> to vector<16x32xf32>
    %233 = arith.mulf %228, %232 : vector<16x32xf32>
    %234 = vector.broadcast %213 : vector<1x32xf32> to vector<16x32xf32>
    %235 = arith.mulf %233, %234 : vector<16x32xf32>
    %236 = vector.broadcast %215 : vector<1x32xf32> to vector<16x32xf32>
    %237 = arith.addf %235, %236 : vector<16x32xf32>
    %c0_119 = arith.constant 0 : index
    %c0_120 = arith.constant 0 : index
    %238 = vector.load %arg18[%c0_119, %c0_120] : memref<16x32xf32, #tpu.memory_space<vmem>>, vector<16x32xf32>
    tpu.vector_store %arg18[%c0_119, %c0_120], %237 {strides = array<i32>} : memref<16x32xf32, #tpu.memory_space<vmem>>, vector<16x32xf32>,
    return
  }
  func.func @transform_0(%arg0: i32) -> (i32, i32) {
    %c0_i32 = arith.constant 0 : i32
    %c0_i32_0 = arith.constant 0 : i32
    return %arg0, %c0_i32 : i32, i32
  }
  func.func @transform_1(%arg0: i32) -> (i32, i32) {
    %c0_i32 = arith.constant 0 : i32
    %c0_i32_0 = arith.constant 0 : i32
    %c0_i32_1 = arith.constant 0 : i32
    return %c0_i32, %c0_i32_0 : i32, i32
  }
  func.func @transform_2(%arg0: i32) -> (i32, i32) {
    %c0_i32 = arith.constant 0 : i32
    %c0_i32_0 = arith.constant 0 : i32
    %c0_i32_1 = arith.constant 0 : i32
    return %c0_i32, %c0_i32_0 : i32, i32
  }
  func.func @transform_3(%arg0: i32) -> (i32, i32, i32) {
    %c0_i32 = arith.constant 0 : i32
    %c0_i32_0 = arith.constant 0 : i32
    %c0_i32_1 = arith.constant 0 : i32
    %c0_i32_2 = arith.constant 0 : i32
    return %c0_i32, %c0_i32_0, %c0_i32_1 : i32, i32, i32
  }
  func.func @transform_4(%arg0: i32) -> (i32, i32, i32) {
    %c0_i32 = arith.constant 0 : i32
    %c0_i32_0 = arith.constant 0 : i32
    %c0_i32_1 = arith.constant 0 : i32
    %c0_i32_2 = arith.constant 0 : i32
    return %c0_i32, %c0_i32_0, %c0_i32_1 : i32, i32, i32
  }
  func.func @transform_5(%arg0: i32) -> (i32, i32, i32) {
    %c0_i32 = arith.constant 0 : i32
    %c0_i32_0 = arith.constant 0 : i32
    %c0_i32_1 = arith.constant 0 : i32
    %c0_i32_2 = arith.constant 0 : i32
    return %c0_i32, %c0_i32_0, %c0_i32_1 : i32, i32, i32
  }
  func.func @transform_6(%arg0: i32) -> (i32, i32, i32) {
    %c0_i32 = arith.constant 0 : i32
    %c0_i32_0 = arith.constant 0 : i32
    %c0_i32_1 = arith.constant 0 : i32
    %c0_i32_2 = arith.constant 0 : i32
    return %c0_i32, %c0_i32_0, %c0_i32_1 : i32, i32, i32
  }
  func.func @transform_7(%arg0: i32) -> (i32, i32, i32) {
    %c0_i32 = arith.constant 0 : i32
    %c0_i32_0 = arith.constant 0 : i32
    %c0_i32_1 = arith.constant 0 : i32
    %c0_i32_2 = arith.constant 0 : i32
    return %c0_i32, %c0_i32_0, %c0_i32_1 : i32, i32, i32
  }
  func.func @transform_8(%arg0: i32) -> (i32, i32, i32) {
    %c0_i32 = arith.constant 0 : i32
    %c0_i32_0 = arith.constant 0 : i32
    %c0_i32_1 = arith.constant 0 : i32
    %c0_i32_2 = arith.constant 0 : i32
    return %c0_i32, %c0_i32_0, %c0_i32_1 : i32, i32, i32
  }
  func.func @transform_9(%arg0: i32) -> (i32, i32, i32) {
    %c0_i32 = arith.constant 0 : i32
    %c0_i32_0 = arith.constant 0 : i32
    %c0_i32_1 = arith.constant 0 : i32
    %c0_i32_2 = arith.constant 0 : i32
    return %c0_i32, %c0_i32_0, %c0_i32_1 : i32, i32, i32
  }
  func.func @transform_10(%arg0: i32) -> (i32, i32, i32) {
    %c0_i32 = arith.constant 0 : i32
    %c0_i32_0 = arith.constant 0 : i32
    %c0_i32_1 = arith.constant 0 : i32
    %c0_i32_2 = arith.constant 0 : i32
    return %c0_i32, %c0_i32_0, %c0_i32_1 : i32, i32, i32
  }
  func.func @transform_11(%arg0: i32) -> (i32, i32, i32) {
    %c0_i32 = arith.constant 0 : i32
    %c0_i32_0 = arith.constant 0 : i32
    %c0_i32_1 = arith.constant 0 : i32
    %c0_i32_2 = arith.constant 0 : i32
    return %c0_i32, %c0_i32_0, %c0_i32_1 : i32, i32, i32
  }
  func.func @transform_12(%arg0: i32) -> (i32, i32, i32) {
    %c0_i32 = arith.constant 0 : i32
    %c0_i32_0 = arith.constant 0 : i32
    %c0_i32_1 = arith.constant 0 : i32
    %c0_i32_2 = arith.constant 0 : i32
    return %c0_i32, %c0_i32_0, %c0_i32_1 : i32, i32, i32
  }
  func.func @transform_13(%arg0: i32) -> (i32, i32, i32) {
    %c0_i32 = arith.constant 0 : i32
    %c0_i32_0 = arith.constant 0 : i32
    %c0_i32_1 = arith.constant 0 : i32
    %c0_i32_2 = arith.constant 0 : i32
    return %c0_i32, %c0_i32_0, %c0_i32_1 : i32, i32, i32
  }
  func.func @transform_14(%arg0: i32) -> (i32, i32, i32) {
    %c0_i32 = arith.constant 0 : i32
    %c0_i32_0 = arith.constant 0 : i32
    %c0_i32_1 = arith.constant 0 : i32
    %c0_i32_2 = arith.constant 0 : i32
    return %c0_i32, %c0_i32_0, %c0_i32_1 : i32, i32, i32
  }
  func.func @transform_15(%arg0: i32) -> (i32, i32) {
    %c0_i32 = arith.constant 0 : i32
    %c0_i32_0 = arith.constant 0 : i32
    %c0_i32_1 = arith.constant 0 : i32
    return %c0_i32, %c0_i32_0 : i32, i32
  }
  func.func @transform_16(%arg0: i32) -> (i32, i32) {
    %c0_i32 = arith.constant 0 : i32
    %c0_i32_0 = arith.constant 0 : i32
    %c0_i32_1 = arith.constant 0 : i32
    return %c0_i32, %c0_i32_0 : i32, i32
  }
  func.func @transform_17(%arg0: i32) -> (i32, i32) {
    %c0_i32 = arith.constant 0 : i32
    %c0_i32_0 = arith.constant 0 : i32
    return %arg0, %c0_i32 : i32, i32
  }
}

</mosaic_0001>

<bundles_post_ra>
// kernel: _forward_impl.1
= control target key start
LH: loop header
LB: loop body
LE: loop exit
PB: predicated region body
PF: predicated region fallthrough
CT: control target
= control target key end

     0   :  { %v2576_v0 = vmov 0   ;;  %v2577_v3 = vmov 1   ;;  %v2578_v4 = vmov 2   ;;  %v2579_v5 = vmov 3   ;;  %s2580_s27 = smov 32   ;;  %s2581_s29 = smov 96   ;;  %s3197_s0 = inlined_call_operand.vmem [shape: f32[16,4], index: 0, kind: input, shape index: {}]   ;;  %s3198_s3 = inlined_call_operand.vmem [shape: f32[2,32,96], index: 3, kind: input, shape index: {}]   ;;  %s3199_s16 = inlined_call_operand.vmem [shape: f32[64,32], index: 16, kind: input, shape index: {}]   ;;  %s3200_s2 = inlined_call_operand.vmem [shape: f32[4,32], index: 2, kind: input, shape index: {}]   ;;  %s3201_s1 = inlined_call_operand.vmem [shape: f32[8,32], index: 1, kind: input, shape index: {}]   ;;  %s3202_s4 = inlined_call_operand.vmem [shape: f32[2,1,96], index: 4, kind: input, shape index: {}]   ;;  %s3203_s15 = inlined_call_operand.vmem [shape: f32[16,64], index: 15, kind: input, shape index: {}]   ;;  %s3204_s5 = inlined_call_operand.vmem [shape: f32[2,32,32], index: 5, kind: input, shape index: {}]   ;;  %s3205_s6 = inlined_call_operand.vmem [shape: f32[2,1,32], index: 6, kind: input, shape index: {}]   ;;  %s3206_s9 = inlined_call_operand.vmem [shape: f32[2,32,64], index: 9, kind: input, shape index: {}]   ;;  %s3207_s11 = inlined_call_operand.vmem [shape: f32[2,64,32], index: 11, kind: input, shape index: {}]   ;;  %s3208_s7 = inlined_call_operand.vmem [shape: f32[2,1,32], index: 7, kind: input, shape index: {}]   ;;  %s3209_s8 = inlined_call_operand.vmem [shape: f32[2,1,32], index: 8, kind: input, shape index: {}]   ;;  %s3210_s10 = inlined_call_operand.vmem [shape: f32[2,1,64], index: 10, kind: input, shape index: {}]   ;;  %s3211_s12 = inlined_call_operand.vmem [shape: f32[2,1,32], index: 12, kind: input, shape index: {}]   ;;  %s3212_s13 = inlined_call_operand.vmem [shape: f32[2,1,32], index: 13, kind: input, shape index: {}]   ;;  %s3213_s14 = inlined_call_operand.vmem [shape: f32[2,1,32], index: 14, kind: input, shape index: {}]   ;;  %s3214_s17 = inlined_call_operand.vmem [shape: f32[16,32], index: 17, kind: output, shape index: {}]  }
   0x1   :  { %3217 = sst [smem:[#allocation2_spill]] %s3197_s0  ;;  %2458 = vset.pattern.permute.xlu1 %v2576_v0  ;;  %2456 = vset.pattern.permute.xlu0 %v2576_v0  ;;  %v2694_v12 = vld [vmem:[%s3199_s16 + $0x8] sm:$0xff]  ;;  %v2699_v13 = vld [vmem:[%s3199_s16] sm:$0xff]  ;;  %v2706_v14 = vld [vmem:[%s3199_s16 + $0x18] sm:$0xff]  ;;  %v69_v20 = vlaneseq  ;;  %vm147_vm0 = vcmask 261120   ;;  %s2582_s0 = smov 64  }
   0x2   :  { %3218 = sst [smem:[#allocation3_spill]] %s3198_s3  ;;  %s3219_s26 = sld [smem:[#allocation2_spill]]  ;;  %v2711_v15 = vld [vmem:[%s3199_s16 + $0x10] sm:$0xff]  ;;  %v2718_v16 = vld [vmem:[%s3199_s16 + $0x28] sm:$0xff]  ;;  %v2723_v17 = vld [vmem:[%s3199_s16 + $0x20] sm:$0xff]  ;;  %vm426_vm2 = vcmask 523264  }
   0x3   :  { %s3220_s30 = sld [smem:[#allocation3_spill]]  ;;  %v2730_v18 = vld [vmem:[%s3199_s16 + $0x38] sm:$0xff]  ;;  %v2735_v19 = vld [vmem:[%s3199_s16 + $0x30] sm:$0xff]  ;;  %v70_v21 = vshrl.u32 %v69_v20, 7  ;;  %v58_v26 = vld [vmem:[%s3200_s2] sm:$0xf] }
   0x4   :  { %v123_v47 = vld [vmem:[%s3201_s1] sm:$0xff]  ;;  %vm2816_vm1 = vmpackc.low %vm147_vm0, %vm147_vm0 }
   0x5   :  { %v71_v24 = vsub.s32 0, %v70_v21  ;;  %v85_v25 = vsub.s32 1, %v70_v21  ;;  %v101_v27 = vsub.s32 2, %v70_v21  ;;  %v117_v35 = vsub.s32 3, %v70_v21  ;;  %v1835_v62 = vld [vmem:[%s3202_s4] ss:$0 sm:$0xff] }
   0x7   :  { %v72_v30 = vrot.slane %v58_v26, %v71_v24  ;;  %v86_v31 = vrot.slane %v58_v26, %v85_v25  ;;  %v102_v34 = vrot.slane %v58_v26, %v101_v27  ;;  %v118_v39 = vrot.slane %v58_v26, %v117_v35 }
   0x8   :  { %v57_v1 = vld [vmem:[%s3219_s26 + $0x8] sm:$0xff]  ;;  %v56_v2 = vld [vmem:[%s3219_s26] sm:$0xff] }
   0x9   :  { %66 = vperm.xlu1 %2458, %v57_v1   ;;  %61 = vperm.xlu0 %2456, %v56_v2   ;;  %v136_v6 = vld [vmem:[%s3220_s30] sm:$0xff]  ;;  %v137_v7 = vld [vmem:[%s3220_s30 + $0x8] sm:$0xff]  ;;  %v138_v9 = vld [vmem:[%s3220_s30 + $0x10] sm:$0xff] }
   0xa   :  { %v2257_v8 = vpack.c.bf16 %v137_v7, %v136_v6  ;;  %v139_v10 = vld [vmem:[%s3220_s30 + $0x18] sm:$0xff] }
   0xb   :  { %v2261_v11 = vpack.c.bf16 %v139_v10, %v138_v9 }
   0xc   :  { %2258 = vmatprep.subr.bf16.mxu1 %v2257_v8 }
   0xd   :  { %2459 = vset.pattern.permute.xlu1 %v2577_v3  ;;  %2457 = vset.pattern.permute.xlu0 %v2577_v3 }
   0xe   :  { %80 = vperm.xlu1 %2459, %v57_v1   ;;  %76 = vperm.xlu0 %2457, %v56_v2  }
   0xf   :  { %2260 = vmatpush3.bf16.msra.mxu1 %v2257_v8 }
  0x10   :  { %2262 = vmatprep.subr.bf16.mxu1 %v2261_v11 }
  0x12   :  { %2460 = vset.pattern.permute.xlu1 %v2578_v4  ;;  %2461 = vset.pattern.permute.xlu0 %v2578_v4 }
  0x13   :  { %92 = vperm.xlu1 %2460, %v56_v2   ;;  %96 = vperm.xlu0 %2461, %v57_v1  }
  0x14   :  { %2264 = vmatpush3.bf16.msra.mxu1 %v2261_v11 }
  0x17   :  { %2462 = vset.pattern.permute.xlu1 %v2579_v5  ;;  %2543 = vset.pattern.permute.xlu0 %v2579_v5 }
  0x18   :  { %108 = vperm.xlu1 %2462, %v56_v2   ;;  %237 = vrot.lane.b32.xlu0 %v2699_v13, %s2580_s27 }
  0x1c   :  { %112 = vperm.xlu1 %2462, %v57_v1   ;;  %241 = vrot.lane.b32.xlu0 %v2711_v15, %s2580_s27 }
  0x20   :  { %239 = vrot.lane.b32.xlu1 %v2694_v12, %s2580_s27  ;;  %245 = vrot.lane.b32.xlu0 %v2723_v17, %s2580_s27 }
  0x24   :  { %243 = vrot.lane.b32.xlu1 %v2706_v14, %s2580_s27  ;;  %249 = vrot.lane.b32.xlu0 %v2735_v19, %s2580_s27 }
  0x28   :  { %247 = vrot.lane.b32.xlu1 %v2718_v16, %s2580_s27 }
  0x2c   :  { %251 = vrot.lane.b32.xlu1 %v2730_v18, %s2580_s27 }
  0x88   :  { %v67_v22 = vpop.permute.xlu1 %66  ;;  %v62_v23 = vpop.permute.xlu0 %61 }
  0x89   :  { %v73_v32 = vmul.f32 %v72_v30, %v62_v23  ;;  %v74_v43 = vmul.f32 %v72_v30, %v67_v22 }
  0x8d   :  { %v81_v28 = vpop.permute.xlu1 %80  ;;  %v77_v29 = vpop.permute.xlu0 %76 }
  0x8e   :  { %v87_v33 = vmul.f32 %v86_v31, %v77_v29  ;;  %v88_v41 = vmul.f32 %v86_v31, %v81_v28 }
  0x90   :  { %v89_v37 = vadd.f32 %v87_v33, %v73_v32  ;;  %v90_v48 = vadd.f32 %v88_v41, %v74_v43 }
  0x92   :  { %v93_v36 = vpop.permute.xlu1 %92  ;;  %v97_v40 = vpop.permute.xlu0 %96 }
  0x93   :  { %v103_v38 = vmul.f32 %v102_v34, %v93_v36  ;;  %v104_v45 = vmul.f32 %v102_v34, %v97_v40 }
  0x95   :  { %v105_v44 = vadd.f32 %v103_v38, %v89_v37  ;;  %v106_v51 = vadd.f32 %v104_v45, %v90_v48 }
  0x96   :  { %v2755_v57 = vpop.permute.xlu0 %237 }
  0x97   :  { %v109_v42 = vpop.permute.xlu1 %108 }
  0x98   :  { %v119_v46 = vmul.f32 %v118_v39, %v109_v42 }
  0x9a   :  { %v121_v49 = vadd.f32 %v119_v46, %v105_v44  ;;  %v2759_v59 = vpop.permute.xlu0 %241 }
  0x9b   :  { %v113_v50 = vpop.permute.xlu1 %112 }
  0x9c   :  { %v120_v52 = vmul.f32 %v118_v39, %v113_v50  ;;  %v2745_v53 = vadd.f32 %v123_v47, %v121_v49 }
  0x9e   :  { %v122_v54 = vadd.f32 %v120_v52, %v106_v51  ;;  %2047 = vmatprep.mubr.msk.f32.mxu1 %vm147_vm0, %v2745_v53  ;;  %v2763_v61 = vpop.permute.xlu0 %245 }
  0x9f   :  { %v2753_v56 = vpop.permute.xlu1 %239 }
  0xa0   :  { %v2749_v55 = vadd.f32 %v123_v47, %v122_v54 }
  0xa2   :  { %2048 = vmatmul.mubr.msk.f32.vlgmr.msra.gmra.mrb[0].mxu1 %vm147_vm0, %v2749_v55  ;;  %v2774_v4 = vpop.permute.xlu0 %249 }
  0xa3   :  { %v2757_v58 = vpop.permute.xlu1 %243 }
  0xa7   :  { %v2761_v60 = vpop.permute.xlu1 %247 }
  0xab   :  { %v2772_v3 = vpop.permute.xlu1 %251 }
 0x175   :  { %v2049_v63 = vpop.f32.mrb[0].mxu1 }
 0x176   :  { %v2768_v0 = vadd.f32 %v2049_v63, %v1835_v62  ;;  %v220_v1 = vpop.f32.mrb[1].mxu1 }
 0x177   :  { %v2770_v2 = vadd.f32 %v1835_v62, %v220_v1 }
 0x178   :  { %v262_v5 = vmul.f32 %v2753_v56, %v2768_v0  ;;  %v264_v6 = vmul.f32 %v2757_v58, %v2768_v0  ;;  %v268_v9 = vmul.f32 %v2772_v3, %v2768_v0  ;;  %v266_v10 = vmul.f32 %v2761_v60, %v2768_v0 }
 0x179   :  { %2066 = vmatprep.mubr.msk.f32.mxu1 %vm147_vm0, %v2770_v2  ;;  %v261_v7 = vmul.f32 %v2755_v57, %v2770_v2  ;;  %v263_v8 = vmul.f32 %v2759_v59, %v2770_v2  ;;  %v267_v11 = vmul.f32 %v2774_v4, %v2770_v2  ;;  %v265_v22 = vmul.f32 %v2763_v61, %v2770_v2 }
 0x17b   :  { %v2463_v20 = vpack.i.bf16 %v262_v5, %v261_v7  ;;  %v2468_v21 = vpack.i.bf16 %v264_v6, %v263_v8  ;;  %v2478_v23 = vpack.i.bf16 %v268_v9, %v267_v11  ;;  %v2473_v24 = vpack.i.bf16 %v266_v10, %v265_v22 }
 0x17d   :  { %2464 = vrot.lane.b32.xlu0 %v2463_v20, %s2581_s29  ;;  %2469 = vrot.lane.b32.xlu1 %v2468_v21, %s2581_s29  ;;  %v2867_v21 = vld [vmem:[%s3203_s15 + $0x8] sm:$0xff] }
 0x181   :  { %2474 = vrot.lane.b32.xlu0 %v2473_v24, %s2581_s29  ;;  %2479 = vrot.lane.b32.xlu1 %v2478_v23, %s2581_s29  ;;  %v2872_v24 = vld [vmem:[%s3203_s15] sm:$0xff] }
 0x185   :  { %269 = vrot.lane.b32.xlu0 %v2699_v13, %s2582_s0  ;;  %271 = vrot.lane.b32.xlu1 %v2694_v12, %s2582_s0 }
 0x189   :  { %273 = vrot.lane.b32.xlu0 %v2711_v15, %s2582_s0  ;;  %275 = vrot.lane.b32.xlu1 %v2706_v14, %s2582_s0 }
 0x18d   :  { %277 = vrot.lane.b32.xlu0 %v2723_v17, %s2582_s0  ;;  %279 = vrot.lane.b32.xlu1 %v2718_v16, %s2582_s0 }
 0x191   :  { %281 = vrot.lane.b32.xlu0 %v2735_v19, %s2582_s0  ;;  %283 = vrot.lane.b32.xlu1 %v2730_v18, %s2582_s0 }
 0x1ef   :  { %v2470_v25 = vpop.permute.xlu1 %2469  ;;  %v2465_v26 = vpop.permute.xlu0 %2464 }
 0x1f0   :  { %v2472_v27 = vunpack.i.h.bf16 %v2470_v25  ;;  %v2471_v28 = vunpack.i.l.bf16 %v2470_v25  ;;  %v2467_v29 = vunpack.i.h.bf16 %v2465_v26  ;;  %v2466_v30 = vunpack.i.l.bf16 %v2465_v26 }
 0x1f2   :  { %v2265_v32 = vpack.c.bf16 %v2467_v29, %v2466_v30  ;;  %v2271_v35 = vpack.c.bf16 %v2472_v27, %v2471_v28 }
 0x1f3   :  { %v2480_v33 = vpop.permute.xlu1 %2479  ;;  %v2475_v34 = vpop.permute.xlu0 %2474 }
 0x1f4   :  { %2267 = vmatprep.subr.msk.bf16.mxu1 %vm2816_vm1, %v2265_v32  ;;  %v2477_v38 = vunpack.i.h.bf16 %v2475_v34  ;;  %v2476_v39 = vunpack.i.l.bf16 %v2475_v34  ;;  %v2482_v49 = vunpack.i.h.bf16 %v2480_v33  ;;  %v2481_v50 = vunpack.i.l.bf16 %v2480_v33 }
 0x1f5   :  { %2270 = vmatpush3.bf16.xpose.msk.msra.mxu1 %vm2816_vm1, %v2265_v32 }
 0x1f6   :  { %2273 = vmatprep.subr.msk.bf16.mxu1 %vm2816_vm1, %v2271_v35  ;;  %v2277_v45 = vpack.c.bf16 %v2477_v38, %v2476_v39  ;;  %v2283_v51 = vpack.c.bf16 %v2482_v49, %v2481_v50 }
 0x1f7   :  { %v2826_v36 = vpop.permute.xlu1 %271  ;;  %v2828_v37 = vpop.permute.xlu0 %269 }
 0x1f8   :  { %v294_v40 = vmul.f32 %v2826_v36, %v2768_v0  ;;  %v293_v41 = vmul.f32 %v2828_v37, %v2770_v2 }
 0x1fa   :  { %v2483_v42 = vpack.i.bf16 %v294_v40, %v293_v41 }
 0x1fb   :  { %v2834_v43 = vpop.permute.xlu1 %275  ;;  %v2836_v44 = vpop.permute.xlu0 %273 }
 0x1fc   :  { %v296_v46 = vmul.f32 %v2834_v43, %v2768_v0  ;;  %v295_v47 = vmul.f32 %v2836_v44, %v2770_v2  ;;  %2484 = vrot.lane.b32.xlu0 %v2483_v42, %s2582_s0 }
 0x1fd   :  { %2276 = vmatpush3.bf16.xpose.msk.msra.mxu1 %vm2816_vm1, %v2271_v35 }
 0x1fe   :  { %v2488_v48 = vpack.i.bf16 %v296_v46, %v295_v47  ;;  %2279 = vmatprep.subr.msk.bf16.mxu1 %vm2816_vm1, %v2277_v45 }
 0x1ff   :  { %v2856_v52 = vpop.permute.xlu0 %277  ;;  %v2858_v54 = vpop.permute.xlu1 %279 }
 0x200   :  { %2489 = vrot.lane.b32.xlu1 %v2488_v48, %s2582_s0  ;;  %v298_v34 = vmul.f32 %v2858_v54, %v2768_v0  ;;  %v297_v35 = vmul.f32 %v2856_v52, %v2770_v2 }
 0x202   :  { %v2493_v38 = vpack.i.bf16 %v298_v34, %v297_v35 }
 0x203   :  { %v2860_v62 = vpop.permute.xlu0 %281  ;;  %v2862_v63 = vpop.permute.xlu1 %283 }
 0x204   :  { %v300_v30 = vmul.f32 %v2862_v63, %v2768_v0  ;;  %v299_v32 = vmul.f32 %v2860_v62, %v2770_v2 }
 0x205   :  { %2282 = vmatpush3.bf16.xpose.msk.msra.mxu1 %vm2816_vm1, %v2277_v45 }
 0x206   :  { %2285 = vmatprep.subr.msk.bf16.mxu1 %vm2816_vm1, %v2283_v51  ;;  %v2498_v33 = vpack.i.bf16 %v300_v30, %v299_v32 }
 0x20d   :  { %2288 = vmatpush3.bf16.xpose.msk.msra.mxu1 %vm2816_vm1, %v2283_v51 }
 0x214   :  { %2067 = vmatmul.mubr.msk.f32.vlgmr.msra.gmra.mrb[2].mxu1 %vm147_vm0, %v2768_v0 }
 0x26e   :  { %v2485_v1 = vpop.permute.xlu0 %2484 }
 0x26f   :  { %v2487_v5 = vunpack.i.h.bf16 %v2485_v1  ;;  %v2486_v6 = vunpack.i.l.bf16 %v2485_v1 }
 0x271   :  { %v2289_v7 = vpack.c.bf16 %v2487_v5, %v2486_v6  ;;  %v2890_v5 = vpack.c.bf16 %v2694_v12, %v2699_v13  ;;  %v2903_v12 = vpack.c.bf16 %v2718_v16, %v2723_v17  ;;  %v2909_v13 = vpack.c.bf16 %v2730_v18, %v2735_v19  ;;  %v633_v17 = vld [vmem:[%s3204_s5 + $0x10] sm:$0xff]  ;;  %v634_v18 = vld [vmem:[%s3204_s5 + $0x18] sm:$0xff] }
 0x272   :  { %v2490_v8 = vpop.permute.xlu1 %2489  ;;  %v2325_v19 = vpack.c.bf16 %v634_v18, %v633_v17  ;;  %v868_v18 = vld [vmem:[%s3207_s11 + $0x20] sm:$0xff] }
 0x273   :  { %v2492_v9 = vunpack.i.h.bf16 %v2490_v8  ;;  %v2491_v10 = vunpack.i.l.bf16 %v2490_v8  ;;  %2290 = vmatprep.subr.bf16.mxu0 %v2289_v7 }
 0x274   :  { %2292 = vmatpush3.bf16.msra.mxu0 %v2289_v7  ;;  %v2894_v7 = vpack.c.bf16 %v2706_v14, %v2711_v15  ;;  %v631_v14 = vld [vmem:[%s3204_s5] sm:$0xff]  ;;  %v632_v15 = vld [vmem:[%s3204_s5 + $0x8] sm:$0xff] }
 0x275   :  { %v2293_v11 = vpack.c.bf16 %v2492_v9, %v2491_v10  ;;  %v2321_v16 = vpack.c.bf16 %v632_v15, %v631_v14  ;;  %v866_v14 = vld [vmem:[%s3207_s11 + $0x10] sm:$0xff] }
 0x277   :  { %2294 = vmatprep.subr.bf16.mxu0 %v2293_v11  ;;  %2322 = vmatprep.subr.bf16.mxu1 %v2321_v16 }
 0x278   :  { %2296 = vmatpush3.bf16.msra.mxu0 %v2293_v11  ;;  %2324 = vmatpush3.bf16.msra.mxu1 %v2321_v16  ;;  %v867_v16 = vld [vmem:[%s3207_s11 + $0x18] sm:$0xff] }
 0x279   :  { %2326 = vmatprep.subr.bf16.mxu1 %v2325_v19  ;;  %v2341_v17 = vpack.c.bf16 %v867_v16, %v866_v14 }
 0x27c   :  { %2328 = vmatpush3.bf16.msra.mxu1 %v2325_v19  ;;  %v869_v19 = vld [vmem:[%s3207_s11 + $0x28] sm:$0xff] }
 0x2e7   :  { %v2068_v20 = vpop.f32.mrb[2].mxu1 }
 0x2e8   :  { %v423_v22 = vmul.f32 0.35355338, %v2068_v20  ;;  %v413_v23 = vpop.f32.mrb[3].mxu1 }
 0x2e9   :  { %v422_v25 = vmul.f32 0.35355338, %v413_v23 }
 0x2ea   :  { %v425_v26 = vadd.f32 %v423_v22, %v2867_v21 }
 0x2eb   :  { %v424_v27 = vadd.f32 %v422_v25, %v2872_v24 }
 0x2ec   :  { %v430_v28 = vsel %vm426_vm2, %v425_v26, -inf }
 0x2ed   :  { %431 = vmax.xlane.f32.xlu1 %v430_v28  ;;  %v427_v29 = vsel %vm426_vm2, %v424_v27, -inf }
 0x2ee   :  { %428 = vmax.xlane.f32.xlu0 %v427_v29 }
 0x2fe   :  { %2499 = vrot.lane.b32.xlu1 %v2498_v33, %s2582_s0 }
 0x304   :  { %2494 = vrot.lane.b32.xlu0 %v2493_v38, %s2582_s0 }
 0x37a   :  { %v432_v39 = vpop.xlane.xlu1 %431 }
 0x37b   :  { %v434_v40 = vsub.f32 %v425_v26, %v432_v39  ;;  %v429_v41 = vpop.xlane.xlu0 %428 }
 0x37c   :  { %v433_v42 = vsub.f32 %v424_v27, %v429_v41  ;;  %v1852_v27 = vld [vmem:[%s3205_s6] ss:$0 sm:$0xff] }
 0x37d   :  { %v437_v45 = vmul.f32 1.442695, %v434_v40 }
 0x37e   :  { %v435_v46 = vmul.f32 1.442695, %v433_v42  ;;  %v2500_v47 = vpop.permute.xlu1 %2499 }
 0x37f   :  { %v2502_v48 = vunpack.i.h.bf16 %v2500_v47  ;;  %v2495_v49 = vpop.permute.xlu0 %2494  ;;  %v2501_v50 = vunpack.i.l.bf16 %v2500_v47 }
 0x380   :  { %2544 = vpow2.f32 %v435_v46  ;;  %v2497_v0 = vunpack.i.h.bf16 %v2495_v49  ;;  %v2496_v51 = vunpack.i.l.bf16 %v2495_v49 }
 0x381   :  { %2546 = vpow2.f32 %v437_v45  ;;  %v2301_v1 = vpack.c.bf16 %v2502_v48, %v2501_v50  ;;  %v771_v50 = vld [vmem:[%s3206_s9 + $0x8] sm:$0xff] }
 0x382   :  { %v2297_v2 = vpack.c.bf16 %v2497_v0, %v2496_v51  ;;  %v772_v51 = vld [vmem:[%s3206_s9 + $0x10] sm:$0xff] }
 0x384   :  { %2298 = vmatprep.subr.bf16.mxu0 %v2297_v2 }
 0x385   :  { %2300 = vmatpush3.bf16.msra.mxu0 %v2297_v2  ;;  %v773_v2 = vld [vmem:[%s3206_s9 + $0x18] sm:$0xff] }
 0x386   :  { %2302 = vmatprep.subr.bf16.mxu0 %v2301_v1 }
 0x389   :  { %2304 = vmatpush3.bf16.msra.mxu0 %v2301_v1  ;;  %v2333_v1 = vpack.c.bf16 %v773_v2, %v772_v51 }
 0x38a   :  { %v2545_v6 = vpop.eup %2544  ;;  %2306 = vmatprep.subr.bf16.mxu0 %v2890_v5 }
 0x38b   :  { %v2547_v8 = vpop.eup %2546  ;;  %2085 = vmatprep.mubr.msk.f32.mxu0 %vm426_vm2, %v2545_v6 }
 0x38c   :  { %2086 = vmatmul.mubr.msk.f32.vlgmr.msra.gmra.mrb[0].mxu0 %vm426_vm2, %v2547_v8 }
 0x38d   :  { %2308 = vmatpush3.bf16.msra.mxu0 %v2890_v5  ;;  %2104 = vmatprep.mubr.msk.f32.mxu0 %vm426_vm2, %v2545_v6  ;;  %v864_v6 = vld [vmem:[%s3207_s11] sm:$0xff] }
 0x38e   :  { %2310 = vmatprep.subr.bf16.mxu0 %v2894_v7 }
 0x391   :  { %2312 = vmatpush3.bf16.msra.mxu0 %v2894_v7 }
 0x392   :  { %2314 = vmatprep.subr.bf16.mxu0 %v2903_v12 }
 0x395   :  { %2316 = vmatpush3.bf16.msra.mxu0 %v2903_v12 }
 0x396   :  { %2318 = vmatprep.subr.bf16.mxu0 %v2909_v13 }
 0x399   :  { %2320 = vmatpush3.bf16.msra.mxu0 %v2909_v13 }
 0x39c   :  { %2105 = vmatmul.mubr.msk.f32.vlgmr.msra.gmra.mrb[2].mxu0 %vm426_vm2, %v2547_v8  ;;  %v865_v8 = vld [vmem:[%s3207_s11 + $0x8] sm:$0xff] }
 0x39d   :  { %v2337_v15 = vpack.c.bf16 %v865_v8, %v864_v6 }
 0x39f   :  { %2338 = vmatprep.subr.bf16.mxu1 %v2337_v15 }
 0x45f   :  { %v2087_v9 = vpop.f32.mrb[0].mxu0 }
 0x460   :  { %v543_v10 = vpop.f32.mrb[1].mxu0 }
 0x46f   :  { %v2106_v11 = vpop.f32.mrb[2].mxu0 }
 0x470   :  { %2548 = vrcp.f32 %v2106_v11  ;;  %v618_v20 = vpop.f32.mrb[3].mxu0 }
 0x471   :  { %2550 = vrcp.f32 %v618_v20 }
 0x47a   :  { %v2549_v22 = vpop.eup %2548 }
 0x47b   :  { %v2551_v23 = vpop.eup %2550  ;;  %v630_v25 = vmul.f32 %v2549_v22, %v2087_v9  ;;  %v2345_v9 = vpack.c.bf16 %v869_v19, %v868_v18 }
 0x47c   :  { %v629_v26 = vmul.f32 %v2551_v23, %v543_v10 }
 0x47e   :  { %2115 = vmatprep.mubr.msk.f32.mxu1 %vm147_vm0, %v629_v26 }
 0x47f   :  { %2116 = vmatmul.mubr.msk.f32.vlgmr.msra.gmra.mrb[4].mxu1 %vm147_vm0, %v630_v25 }
 0x480   :  { %2340 = vmatpush3.bf16.msra.mxu1 %v2337_v15 }
 0x481   :  { %2342 = vmatprep.subr.bf16.mxu1 %v2341_v17 }
 0x484   :  { %2344 = vmatpush3.bf16.msra.mxu1 %v2341_v17 }
 0x485   :  { %2346 = vmatprep.subr.bf16.mxu1 %v2345_v9 }
 0x488   :  { %2348 = vmatpush3.bf16.msra.mxu1 %v2345_v9 }
 0x552   :  { %v2117_v28 = vpop.f32.mrb[4].mxu1 }
 0x553   :  { %v720_v29 = vadd.f32 %v2117_v28, %v1852_v27  ;;  %v714_v30 = vpop.f32.mrb[5].mxu1 }
 0x554   :  { %v715_v32 = vadd.f32 %v1852_v27, %v714_v30  ;;  %v1855_v27 = vld [vmem:[%s3208_s7] ss:$0 sm:$0xff] }
 0x555   :  { %v724_v33 = vadd.f32 %v720_v29, %v2749_v55  ;;  %v1856_v29 = vld [vmem:[%s3209_s8] ss:$0 sm:$0xff] }
 0x556   :  { %v723_v34 = vadd.f32 %v715_v32, %v2745_v53  ;;  %v770_v53 = vld [vmem:[%s3206_s9] sm:$0xff] }
 0x557   :  { %v730_v35 = vsel %vm147_vm0, %v724_v33, 0.0  ;;  %v2329_v0 = vpack.c.bf16 %v771_v50, %v770_v53  ;;  %v1860_v53 = vld [vmem:[%s3211_s12] ss:$0 sm:$0xff] }
 0x558   :  { %731 = vadd.xlane.f32.xlu1 %v730_v35  ;;  %v727_v38 = vsel %vm147_vm0, %v723_v34, 0.0 }
 0x559   :  { %728 = vadd.xlane.f32.xlu0 %v727_v38  ;;  %2330 = vmatprep.subr.bf16.mxu0 %v2329_v0 }
 0x55a   :  { %2332 = vmatpush3.bf16.msra.mxu0 %v2329_v0 }
 0x55b   :  { %2334 = vmatprep.subr.bf16.mxu0 %v2333_v1 }
 0x55e   :  { %2336 = vmatpush3.bf16.msra.mxu0 %v2333_v1 }
 0x5e5   :  { %v732_v39 = vpop.xlane.xlu1 %731 }
 0x5e6   :  { %v735_v40 = vmul.f32 0.03125, %v732_v39  ;;  %v729_v41 = vpop.xlane.xlu0 %728  ;;  %v870_v39 = vld [vmem:[%s3207_s11 + $0x30] sm:$0xff] }
 0x5e7   :  { %v734_v42 = vmul.f32 0.03125, %v729_v41 }
 0x5e8   :  { %v737_v45 = vsub.f32 %v724_v33, %v735_v40  ;;  %v871_v40 = vld [vmem:[%s3207_s11 + $0x38] sm:$0xff] }
 0x5e9   :  { %v736_v46 = vsub.f32 %v723_v34, %v734_v42  ;;  %v2349_v41 = vpack.c.bf16 %v871_v40, %v870_v39  ;;  %v1857_v42 = vld [vmem:[%s3210_s10] ss:$0 sm:$0xff] }
 0x5ea   :  { %v739_v49 = vmul.f32 %v737_v45, %v737_v45  ;;  %v1863_v40 = vld [vmem:[%s3212_s13] ss:$0 sm:$0xff] }
 0x5eb   :  { %v738_v47 = vmul.f32 %v736_v46, %v736_v46  ;;  %2350 = vmatprep.subr.bf16.mxu1 %v2349_v41 }
 0x5ec   :  { %v743_v55 = vsel %vm147_vm0, %v739_v49, 0.0  ;;  %2352 = vmatpush3.bf16.msra.mxu1 %v2349_v41 }
 0x5ed   :  { %v740_v48 = vsel %vm147_vm0, %v738_v47, 0.0 }
 0x5ee   :  { %741 = vadd.xlane.f32.xlu0 %v740_v48 }
 0x5f2   :  { %744 = vadd.xlane.f32.xlu0 %v743_v55 }
 0x67b   :  { %v742_v10 = vpop.xlane.xlu0 %741 }
 0x67c   :  { %v746_v11 = vmul.f32 0.03125, %v742_v10 }
 0x67e   :  { %v748_v20 = vadd.f32 1e-05, %v746_v11 }
 0x67f   :  { %v745_v22 = vpop.xlane.xlu0 %744 }
 0x680   :  { %2552 = vrsqrt.f32 %v748_v20  ;;  %v747_v23 = vmul.f32 0.03125, %v745_v22 }
 0x682   :  { %v749_v25 = vadd.f32 1e-05, %v747_v23  ;;  %v1865_v23 = vld [vmem:[%s3220_s30 + $0x20] sm:$0xff] }
 0x684   :  { %2554 = vrsqrt.f32 %v749_v25  ;;  %v1866_v25 = vld [vmem:[%s3220_s30 + $0x28] sm:$0xff] }
 0x68a   :  { %v2553_v26 = vpop.eup %2552 }
 0x68b   :  { %v752_v28 = vmul.f32 %v2553_v26, %v736_v46  ;;  %v2353_v26 = vpack.c.bf16 %v1866_v25, %v1865_v23 }
 0x68d   :  { %v760_v30 = vmul.f32 %v1855_v27, %v752_v28  ;;  %2354 = vmatprep.subr.bf16.mxu0 %v2353_v26  ;;  %v1868_v28 = vld [vmem:[%s3220_s30 + $0x38] sm:$0xff] }
 0x68e   :  { %v2555_v32 = vpop.eup %2554 }
 0x68f   :  { %v753_v33 = vmul.f32 %v2555_v32, %v737_v45  ;;  %v768_v34 = vadd.f32 %v1856_v29, %v760_v30 }
 0x691   :  { %v761_v35 = vmul.f32 %v1855_v27, %v753_v33  ;;  %2126 = vmatprep.mubr.msk.f32.mxu0 %vm147_vm0, %v768_v34  ;;  %v1867_v27 = vld [vmem:[%s3220_s30 + $0x30] sm:$0xff] }
 0x693   :  { %v769_v38 = vadd.f32 %v1856_v29, %v761_v35  ;;  %v2357_v29 = vpack.c.bf16 %v1868_v28, %v1867_v27 }
 0x695   :  { %2127 = vmatmul.mubr.msk.f32.vlgmr.msra.gmra.mrb[4].mxu0 %vm147_vm0, %v769_v38 }
 0x696   :  { %2356 = vmatpush3.bf16.msra.mxu0 %v2353_v26 }
 0x697   :  { %2358 = vmatprep.subr.bf16.mxu0 %v2357_v29 }
 0x69a   :  { %2360 = vmatpush3.bf16.msra.mxu0 %v2357_v29 }
 0x768   :  { %v2128_v45 = vpop.f32.mrb[4].mxu0 }
 0x769   :  { %v859_v46 = vadd.f32 %v2128_v45, %v1857_v42  ;;  %v853_v47 = vpop.f32.mrb[5].mxu0 }
 0x76a   :  { %v854_v48 = vadd.f32 %v1857_v42, %v853_v47 }
 0x76b   :  { %v863_v55 = vmax.f32 %v859_v46, 0.0  ;;  %v1864_v46 = vld [vmem:[%s3213_s14] ss:$0 sm:$0xff] }
 0x76c   :  { %v862_v49 = vmax.f32 %v854_v48, 0.0 }
 0x76e   :  { %2145 = vmatprep.mubr.msk.f32.mxu1 %vm426_vm2, %v862_v49 }
 0x76f   :  { %2146 = vmatmul.mubr.msk.f32.vlgmr.msra.gmra.mrb[6].mxu1 %vm426_vm2, %v863_v55 }
 0x842   :  { %v2147_v50 = vpop.f32.mrb[6].mxu1 }
 0x843   :  { %v957_v0 = vadd.f32 %v2147_v50, %v1860_v53  ;;  %v951_v51 = vpop.f32.mrb[7].mxu1 }
 0x844   :  { %v952_v2 = vadd.f32 %v1860_v53, %v951_v51  ;;  %v1870_v53 = vld [vmem:[%s3202_s4 + $0x1] ss:$0 sm:$0xff] }
 0x845   :  { %v961_v1 = vadd.f32 %v957_v0, %v769_v38 }
 0x846   :  { %v960_v6 = vadd.f32 %v952_v2, %v768_v34 }
 0x847   :  { %v967_v8 = vsel %vm147_vm0, %v961_v1, 0.0 }
 0x848   :  { %968 = vadd.xlane.f32.xlu0 %v967_v8  ;;  %v964_v14 = vsel %vm147_vm0, %v960_v6, 0.0 }
 0x849   :  { %965 = vadd.xlane.f32.xlu1 %v964_v14 }
 0x8d5   :  { %v969_v15 = vpop.xlane.xlu0 %968 }
 0x8d6   :  { %v971_v16 = vmul.f32 0.03125, %v969_v15  ;;  %v966_v17 = vpop.xlane.xlu1 %965 }
 0x8d7   :  { %v970_v18 = vmul.f32 0.03125, %v966_v17 }
 0x8d8   :  { %v973_v19 = vsub.f32 %v961_v1, %v971_v16 }
 0x8d9   :  { %v972_v9 = vsub.f32 %v960_v6, %v970_v18 }
 0x8da   :  { %v975_v10 = vmul.f32 %v973_v19, %v973_v19 }
 0x8db   :  { %v974_v11 = vmul.f32 %v972_v9, %v972_v9 }
 0x8dc   :  { %v979_v20 = vsel %vm147_vm0, %v975_v10, 0.0 }
 0x8dd   :  { %980 = vadd.xlane.f32.xlu0 %v979_v20  ;;  %v976_v22 = vsel %vm147_vm0, %v974_v11, 0.0 }
 0x8de   :  { %977 = vadd.xlane.f32.xlu1 %v976_v22 }
 0x96a   :  { %v981_v30 = vpop.xlane.xlu0 %980 }
 0x96b   :  { %v983_v32 = vmul.f32 0.03125, %v981_v30  ;;  %v978_v33 = vpop.xlane.xlu1 %977 }
 0x96c   :  { %v982_v34 = vmul.f32 0.03125, %v978_v33 }
 0x96d   :  { %v985_v35 = vadd.f32 1e-05, %v983_v32 }
 0x96e   :  { %v984_v38 = vadd.f32 1e-05, %v982_v34 }
 0x96f   :  { %2556 = vrsqrt.f32 %v985_v35 }
 0x970   :  { %2558 = vrsqrt.f32 %v984_v38 }
 0x979   :  { %v2557_v39 = vpop.eup %2556 }
 0x97a   :  { %v2559_v41 = vpop.eup %2558  ;;  %v989_v42 = vmul.f32 %v2557_v39, %v973_v19 }
 0x97b   :  { %v988_v45 = vmul.f32 %v2559_v41, %v972_v9 }
 0x97c   :  { %v997_v47 = vmul.f32 %v1863_v40, %v989_v42 }
 0x97d   :  { %v996_v48 = vmul.f32 %v1863_v40, %v988_v45 }
 0x97e   :  { %v3015_v55 = vadd.f32 %v1864_v46, %v997_v47 }
 0x97f   :  { %v3013_v49 = vadd.f32 %v1864_v46, %v996_v48 }
 0x981   :  { %2156 = vmatprep.mubr.msk.f32.mxu0 %vm147_vm0, %v3013_v49 }
 0x982   :  { %2157 = vmatmul.mubr.msk.f32.vlgmr.msra.gmra.mrb[6].mxu0 %vm147_vm0, %v3015_v55 }
 0xa55   :  { %v2158_v50 = vpop.f32.mrb[6].mxu0 }
 0xa56   :  { %v3024_v0 = vadd.f32 %v2158_v50, %v1870_v53  ;;  %v1091_v51 = vpop.f32.mrb[7].mxu0 }
 0xa57   :  { %v3026_v2 = vadd.f32 %v1870_v53, %v1091_v51 }
 0xa58   :  { %v1103_v1 = vmul.f32 %v3024_v0, %v2757_v58  ;;  %v1101_v6 = vmul.f32 %v3024_v0, %v2753_v56  ;;  %v1109_v15 = vmul.f32 %v3024_v0, %v2826_v36  ;;  %v1105_v16 = vmul.f32 %v3024_v0, %v2761_v60 }
 0xa59   :  { %2175 = vmatprep.mubr.msk.f32.mxu0 %vm147_vm0, %v3026_v2  ;;  %v1102_v8 = vmul.f32 %v3026_v2, %v2759_v59  ;;  %v1100_v14 = vmul.f32 %v3026_v2, %v2755_v57  ;;  %v1108_v56 = vmul.f32 %v3026_v2, %v2828_v37  ;;  %v1104_v18 = vmul.f32 %v3026_v2, %v2763_v61 }
 0xa5a   :  { %v1106_v36 = vmul.f32 %v3026_v2, %v2774_v4  ;;  %v1107_v60 = vmul.f32 %v3024_v0, %v2772_v3  ;;  %v1110_v61 = vmul.f32 %v3026_v2, %v2836_v44  ;;  %v1111_v19 = vmul.f32 %v3024_v0, %v2834_v43 }
 0xa5b   :  { %v2508_v17 = vpack.i.bf16 %v1103_v1, %v1102_v8  ;;  %v2503_v58 = vpack.i.bf16 %v1101_v6, %v1100_v14  ;;  %v2523_v59 = vpack.i.bf16 %v1109_v15, %v1108_v56  ;;  %v2513_v57 = vpack.i.bf16 %v1105_v16, %v1104_v18 }
 0xa5c   :  { %v2518_v37 = vpack.i.bf16 %v1107_v60, %v1106_v36  ;;  %v2528_v9 = vpack.i.bf16 %v1111_v19, %v1110_v61  ;;  %v1114_v31 = vmul.f32 %v3026_v2, %v2860_v62  ;;  %v1115_v6 = vmul.f32 %v3024_v0, %v2862_v63 }
 0xa5d   :  { %2509 = vrot.lane.b32.xlu0 %v2508_v17, %s2581_s29  ;;  %2504 = vrot.lane.b32.xlu1 %v2503_v58, %s2581_s29 }
 0xa5e   :  { %v2538_v8 = vpack.i.bf16 %v1115_v6, %v1114_v31  ;;  %v1910_v6 = vld [vmem:[%s3207_s11 + $0x58] sm:$0xff] }
 0xa61   :  { %2524 = vrot.lane.b32.xlu0 %v2523_v59, %s2582_s0  ;;  %2514 = vrot.lane.b32.xlu1 %v2513_v57, %s2581_s29 }
 0xa65   :  { %2519 = vrot.lane.b32.xlu1 %v2518_v37, %s2581_s29  ;;  %v1888_v37 = vld [vmem:[%s3204_s5 + $0x28] sm:$0xff] }
 0xa69   :  { %2529 = vrot.lane.b32.xlu1 %v2528_v9, %s2582_s0 }
 0xacf   :  { %v2510_v4 = vpop.permute.xlu0 %2509  ;;  %v2505_v10 = vpop.permute.xlu1 %2504 }
 0xad0   :  { %v2512_v11 = vunpack.i.h.bf16 %v2510_v4  ;;  %v2511_v3 = vunpack.i.l.bf16 %v2510_v4  ;;  %v2507_v20 = vunpack.i.h.bf16 %v2505_v10  ;;  %v2506_v22 = vunpack.i.l.bf16 %v2505_v10 }
 0xad2   :  { %v2361_v23 = vpack.c.bf16 %v2507_v20, %v2506_v22  ;;  %v2367_v27 = vpack.c.bf16 %v2512_v11, %v2511_v3 }
 0xad3   :  { %v2525_v25 = vpop.permute.xlu0 %2524  ;;  %v2515_v26 = vpop.permute.xlu1 %2514 }
 0xad4   :  { %v2527_v28 = vunpack.i.h.bf16 %v2525_v25  ;;  %v2526_v44 = vunpack.i.l.bf16 %v2525_v25  ;;  %2363 = vmatprep.subr.msk.bf16.mxu0 %vm2816_vm1, %v2361_v23  ;;  %v2517_v30 = vunpack.i.h.bf16 %v2515_v26  ;;  %v2516_v32 = vunpack.i.l.bf16 %v2515_v26 }
 0xad5   :  { %2366 = vmatpush3.bf16.xpose.msk.msra.mxu0 %vm2816_vm1, %v2361_v23  ;;  %v1892_v23 = vld [vmem:[%s3205_s6 + $0x1] ss:$0 sm:$0xff] }
 0xad6   :  { %v2385_v43 = vpack.c.bf16 %v2527_v28, %v2526_v44  ;;  %2369 = vmatprep.subr.msk.bf16.mxu0 %vm2816_vm1, %v2367_v27  ;;  %v2373_v34 = vpack.c.bf16 %v2517_v30, %v2516_v32 }
 0xad7   :  { %v2520_v29 = vpop.permute.xlu1 %2519 }
 0xad8   :  { %2386 = vmatprep.subr.bf16.mxu1 %v2385_v43  ;;  %v2522_v40 = vunpack.i.h.bf16 %v2520_v29  ;;  %v2521_v41 = vunpack.i.l.bf16 %v2520_v29 }
 0xad9   :  { %2388 = vmatpush3.bf16.msra.mxu1 %v2385_v43 }
 0xada   :  { %v2379_v42 = vpack.c.bf16 %v2522_v40, %v2521_v41 }
 0xadb   :  { %v2530_v33 = vpop.permute.xlu1 %2529 }
 0xadc   :  { %v2532_v35 = vunpack.i.h.bf16 %v2530_v33  ;;  %v2531_v38 = vunpack.i.l.bf16 %v2530_v33 }
 0xadd   :  { %2372 = vmatpush3.bf16.xpose.msk.msra.mxu0 %vm2816_vm1, %v2367_v27 }
 0xade   :  { %v2389_v39 = vpack.c.bf16 %v2532_v35, %v2531_v38  ;;  %2375 = vmatprep.subr.msk.bf16.mxu0 %vm2816_vm1, %v2373_v34 }
 0xae0   :  { %2390 = vmatprep.subr.bf16.mxu1 %v2389_v39 }
 0xae1   :  { %2392 = vmatpush3.bf16.msra.mxu1 %v2389_v39 }
 0xae5   :  { %2378 = vmatpush3.bf16.xpose.msk.msra.mxu0 %vm2816_vm1, %v2373_v34 }
 0xae6   :  { %2381 = vmatprep.subr.msk.bf16.mxu0 %vm2816_vm1, %v2379_v42 }
 0xaed   :  { %2384 = vmatpush3.bf16.xpose.msk.msra.mxu0 %vm2816_vm1, %v2379_v42 }
 0xaf4   :  { %2176 = vmatmul.mubr.msk.f32.vlgmr.msra.gmra.mrb[8].mxu0 %vm147_vm0, %v3024_v0 }
 0xbc7   :  { %v2177_v45 = vpop.f32.mrb[8].mxu0 }
 0xbc8   :  { %v1238_v46 = vmul.f32 0.35355338, %v2177_v45  ;;  %v1228_v47 = vpop.f32.mrb[9].mxu0  ;;  %v1900_v45 = vld [vmem:[%s3206_s9 + $0x28] sm:$0xff] }
 0xbc9   :  { %v1237_v48 = vmul.f32 0.35355338, %v1228_v47 }
 0xbca   :  { %v1240_v53 = vadd.f32 %v1238_v46, %v2867_v21  ;;  %v1112_v21 = vmul.f32 %v3026_v2, %v2856_v52  ;;  %v1901_v46 = vld [vmem:[%s3206_s9 + $0x30] sm:$0xff] }
 0xbcb   :  { %v1239_v50 = vadd.f32 %v1237_v48, %v2872_v24  ;;  %v1113_v24 = vmul.f32 %v3024_v0, %v2858_v54  ;;  %v1902_v48 = vld [vmem:[%s3206_s9 + $0x38] sm:$0xff] }
 0xbcc   :  { %v1244_v51 = vsel %vm426_vm2, %v1240_v53, -inf }
 0xbcd   :  { %1245 = vmax.xlane.f32.xlu1 %v1244_v51  ;;  %v1241_v1 = vsel %vm426_vm2, %v1239_v50, -inf  ;;  %v2533_v14 = vpack.i.bf16 %v1113_v24, %v1112_v21  ;;  %v1908_v51 = vld [vmem:[%s3207_s11 + $0x48] sm:$0xff]  ;;  %v1911_v21 = vld [vmem:[%s3207_s11 + $0x60] sm:$0xff] }
 0xbce   :  { %1242 = vmax.xlane.f32.xlu0 %v1241_v1  ;;  %v1909_v1 = vld [vmem:[%s3207_s11 + $0x50] sm:$0xff]  ;;  %v1912_v24 = vld [vmem:[%s3207_s11 + $0x68] sm:$0xff] }
 0xbde   :  { %2539 = vrot.lane.b32.xlu1 %v2538_v8, %s2582_s0  ;;  %v2437_v8 = vpack.c.bf16 %v1910_v6, %v1909_v1 }
 0xbe4   :  { %2534 = vrot.lane.b32.xlu0 %v2533_v14, %s2582_s0  ;;  %v2441_v14 = vpack.c.bf16 %v1912_v24, %v1911_v21 }
 0xc5a   :  { %v1246_v15 = vpop.xlane.xlu1 %1245 }
 0xc5b   :  { %v1248_v16 = vsub.f32 %v1240_v53, %v1246_v15  ;;  %v1243_v17 = vpop.xlane.xlu0 %1242  ;;  %v2429_v53 = vpack.c.bf16 %v1902_v48, %v1901_v46 }
 0xc5c   :  { %v1247_v58 = vsub.f32 %v1239_v50, %v1243_v17  ;;  %v1907_v50 = vld [vmem:[%s3207_s11 + $0x40] sm:$0xff] }
 0xc5d   :  { %v1251_v62 = vmul.f32 1.442695, %v1248_v16  ;;  %v2433_v31 = vpack.c.bf16 %v1908_v51, %v1907_v50  ;;  %v1922_v50 = vld [vmem:[%s3213_s14 + $0x1] ss:$0 sm:$0xff] }
 0xc5e   :  { %v1249_v56 = vmul.f32 1.442695, %v1247_v58  ;;  %v2540_v18 = vpop.permute.xlu1 %2539 }
 0xc5f   :  { %v2542_v63 = vunpack.i.h.bf16 %v2540_v18  ;;  %v2535_v59 = vpop.permute.xlu0 %2534  ;;  %v2541_v57 = vunpack.i.l.bf16 %v2540_v18 }
 0xc60   :  { %2560 = vpow2.f32 %v1249_v56  ;;  %v2537_v36 = vunpack.i.h.bf16 %v2535_v59  ;;  %v2536_v60 = vunpack.i.l.bf16 %v2535_v59 }
 0xc61   :  { %2562 = vpow2.f32 %v1251_v62  ;;  %v2397_v2 = vpack.c.bf16 %v2542_v63, %v2541_v57  ;;  %v1897_v63 = vld [vmem:[%s3208_s7 + $0x1] ss:$0 sm:$0xff] }
 0xc62   :  { %v2393_v52 = vpack.c.bf16 %v2537_v36, %v2536_v60  ;;  %v1898_v57 = vld [vmem:[%s3209_s8 + $0x1] ss:$0 sm:$0xff] }
 0xc64   :  { %2394 = vmatprep.subr.bf16.mxu1 %v2393_v52 }
 0xc65   :  { %2396 = vmatpush3.bf16.msra.mxu1 %v2393_v52 }
 0xc66   :  { %2398 = vmatprep.subr.bf16.mxu1 %v2397_v2 }
 0xc69   :  { %2400 = vmatpush3.bf16.msra.mxu1 %v2397_v2 }
 0xc6a   :  { %v2561_v54 = vpop.eup %2560  ;;  %2402 = vmatprep.subr.bf16.mxu1 %v2890_v5 }
 0xc6b   :  { %v2563_v0 = vpop.eup %2562  ;;  %2194 = vmatprep.mubr.msk.f32.mxu1 %vm426_vm2, %v2561_v54 }
 0xc6c   :  { %2195 = vmatmul.mubr.msk.f32.vlgmr.msra.gmra.mrb[8].mxu1 %vm426_vm2, %v2563_v0 }
 0xc6d   :  { %2404 = vmatpush3.bf16.msra.mxu1 %v2890_v5  ;;  %2213 = vmatprep.mubr.msk.f32.mxu1 %vm426_vm2, %v2561_v54  ;;  %v1887_v5 = vld [vmem:[%s3204_s5 + $0x20] sm:$0xff] }
 0xc6e   :  { %2406 = vmatprep.subr.bf16.mxu1 %v2894_v7  ;;  %v2417_v61 = vpack.c.bf16 %v1888_v37, %v1887_v5  ;;  %v1913_v5 = vld [vmem:[%s3207_s11 + $0x70] sm:$0xff]  ;;  %v1914_v37 = vld [vmem:[%s3207_s11 + $0x78] sm:$0xff] }
 0xc70   :  { %2418 = vmatprep.subr.bf16.mxu0 %v2417_v61 }
 0xc71   :  { %2408 = vmatpush3.bf16.msra.mxu1 %v2894_v7  ;;  %v1889_v7 = vld [vmem:[%s3204_s5 + $0x30] sm:$0xff]  ;;  %2420 = vmatpush3.bf16.msra.mxu0 %v2417_v61  ;;  %v2445_v61 = vpack.c.bf16 %v1914_v37, %v1913_v5 }
 0xc72   :  { %2410 = vmatprep.subr.bf16.mxu1 %v2903_v12 }
 0xc75   :  { %2412 = vmatpush3.bf16.msra.mxu1 %v2903_v12  ;;  %v1890_v12 = vld [vmem:[%s3204_s5 + $0x38] sm:$0xff] }
 0xc76   :  { %2414 = vmatprep.subr.bf16.mxu1 %v2909_v13 }
 0xc79   :  { %2416 = vmatpush3.bf16.msra.mxu1 %v2909_v13  ;;  %v2421_v13 = vpack.c.bf16 %v1890_v12, %v1889_v7  ;;  %v1904_v7 = vld [vmem:[%s3210_s10 + $0x1] ss:$0 sm:$0xff] }
 0xc7b   :  { %2422 = vmatprep.subr.bf16.mxu0 %v2421_v13 }
 0xc7c   :  { %2214 = vmatmul.mubr.msk.f32.vlgmr.msra.gmra.mrb[10].mxu1 %vm426_vm2, %v2563_v0  ;;  %2424 = vmatpush3.bf16.msra.mxu0 %v2421_v13 }
 0xc7d   :  { %2434 = vmatprep.subr.bf16.mxu0 %v2433_v31 }
 0xd3f   :  { %v2196_v19 = vpop.f32.mrb[8].mxu1 }
 0xd40   :  { %v1357_v9 = vpop.f32.mrb[9].mxu1 }
 0xd4f   :  { %v2215_v4 = vpop.f32.mrb[10].mxu1 }
 0xd50   :  { %2564 = vrcp.f32 %v2215_v4  ;;  %v1432_v10 = vpop.f32.mrb[11].mxu1 }
 0xd51   :  { %2566 = vrcp.f32 %v1432_v10 }
 0xd5a   :  { %v2565_v11 = vpop.eup %2564 }
 0xd5b   :  { %v2567_v3 = vpop.eup %2566  ;;  %v1444_v20 = vmul.f32 %v2565_v11, %v2196_v19  ;;  %v1916_v11 = vld [vmem:[%s3211_s12 + $0x1] ss:$0 sm:$0xff] }
 0xd5c   :  { %v1443_v22 = vmul.f32 %v2567_v3, %v1357_v9 }
 0xd5e   :  { %2224 = vmatprep.mubr.msk.f32.mxu0 %vm147_vm0, %v1443_v22 }
 0xd5f   :  { %2225 = vmatmul.mubr.msk.f32.vlgmr.msra.gmra.mrb[10].mxu0 %vm147_vm0, %v1444_v20 }
 0xd60   :  { %2436 = vmatpush3.bf16.msra.mxu0 %v2433_v31 }
 0xd61   :  { %2438 = vmatprep.subr.bf16.mxu0 %v2437_v8 }
 0xd64   :  { %2440 = vmatpush3.bf16.msra.mxu0 %v2437_v8 }
 0xd65   :  { %2442 = vmatprep.subr.bf16.mxu0 %v2441_v14 }
 0xd68   :  { %2444 = vmatpush3.bf16.msra.mxu0 %v2441_v14 }
 0xd69   :  { %2446 = vmatprep.subr.bf16.mxu0 %v2445_v61 }
 0xd6c   :  { %2448 = vmatpush3.bf16.msra.mxu0 %v2445_v61 }
 0xe32   :  { %v2226_v25 = vpop.f32.mrb[10].mxu0 }
 0xe33   :  { %v1536_v26 = vadd.f32 %v2226_v25, %v1892_v23  ;;  %v1530_v27 = vpop.f32.mrb[11].mxu0 }
 0xe34   :  { %v1531_v28 = vadd.f32 %v1892_v23, %v1530_v27 }
 0xe35   :  { %v1540_v44 = vadd.f32 %v1536_v26, %v3015_v55 }
 0xe36   :  { %v1539_v43 = vadd.f32 %v1531_v28, %v3013_v49  ;;  %v1899_v49 = vld [vmem:[%s3206_s9 + $0x20] sm:$0xff] }
 0xe37   :  { %v1548_v29 = vsel %vm147_vm0, %v1540_v44, 0.0  ;;  %v2425_v47 = vpack.c.bf16 %v1900_v45, %v1899_v49 }
 0xe38   :  { %1549 = vadd.xlane.f32.xlu1 %v1548_v29  ;;  %v1545_v30 = vsel %vm147_vm0, %v1539_v43, 0.0 }
 0xe39   :  { %1546 = vadd.xlane.f32.xlu0 %v1545_v30  ;;  %2426 = vmatprep.subr.bf16.mxu1 %v2425_v47 }
 0xe3a   :  { %2428 = vmatpush3.bf16.msra.mxu1 %v2425_v47  ;;  %v1921_v47 = vld [vmem:[%s3212_s13 + $0x1] ss:$0 sm:$0xff] }
 0xe3b   :  { %2430 = vmatprep.subr.bf16.mxu1 %v2429_v53 }
 0xe3e   :  { %2432 = vmatpush3.bf16.msra.mxu1 %v2429_v53 }
 0xec5   :  { %v1550_v32 = vpop.xlane.xlu1 %1549 }
 0xec6   :  { %v1552_v33 = vmul.f32 0.03125, %v1550_v32  ;;  %v1547_v34 = vpop.xlane.xlu0 %1546 }
 0xec7   :  { %v1551_v35 = vmul.f32 0.03125, %v1547_v34 }
 0xec8   :  { %v1554_v38 = vsub.f32 %v1540_v44, %v1552_v33 }
 0xec9   :  { %v1553_v39 = vsub.f32 %v1539_v43, %v1551_v35 }
 0xeca   :  { %v1556_v42 = vmul.f32 %v1554_v38, %v1554_v38 }
 0xecb   :  { %v1555_v40 = vmul.f32 %v1553_v39, %v1553_v39 }
 0xecc   :  { %v1560_v55 = vsel %vm147_vm0, %v1556_v42, 0.0 }
 0xecd   :  { %v1557_v41 = vsel %vm147_vm0, %v1555_v40, 0.0 }
 0xece   :  { %1558 = vadd.xlane.f32.xlu0 %v1557_v41 }
 0xed2   :  { %1561 = vadd.xlane.f32.xlu0 %v1560_v55 }
 0xf5b   :  { %v1559_v15 = vpop.xlane.xlu0 %1558 }
 0xf5c   :  { %v1563_v16 = vmul.f32 0.03125, %v1559_v15 }
 0xf5e   :  { %v1565_v17 = vadd.f32 1e-05, %v1563_v16 }
 0xf5f   :  { %v1562_v58 = vpop.xlane.xlu0 %1561 }
 0xf60   :  { %2568 = vrsqrt.f32 %v1565_v17  ;;  %v1564_v62 = vmul.f32 0.03125, %v1562_v58 }
 0xf62   :  { %v1566_v56 = vadd.f32 1e-05, %v1564_v62 }
 0xf64   :  { %2570 = vrsqrt.f32 %v1566_v56 }
 0xf6a   :  { %v2569_v18 = vpop.eup %2568 }
 0xf6b   :  { %v1569_v59 = vmul.f32 %v2569_v18, %v1553_v39 }
 0xf6d   :  { %v1577_v36 = vmul.f32 %v1897_v63, %v1569_v59 }
 0xf6e   :  { %v2571_v60 = vpop.eup %2570 }
 0xf6f   :  { %v1570_v52 = vmul.f32 %v2571_v60, %v1554_v38  ;;  %v1585_v2 = vadd.f32 %v1898_v57, %v1577_v36 }
 0xf71   :  { %v1578_v54 = vmul.f32 %v1897_v63, %v1570_v52  ;;  %2235 = vmatprep.mubr.msk.f32.mxu1 %vm147_vm0, %v1585_v2 }
 0xf73   :  { %v1586_v0 = vadd.f32 %v1898_v57, %v1578_v54 }
 0xf75   :  { %2236 = vmatmul.mubr.msk.f32.vlgmr.msra.gmra.mrb[12].mxu1 %vm147_vm0, %v1586_v0 }
0x1048   :  { %v2237_v12 = vpop.f32.mrb[12].mxu1 }
0x1049   :  { %v1678_v13 = vadd.f32 %v2237_v12, %v1904_v7  ;;  %v1672_v19 = vpop.f32.mrb[13].mxu1 }
0x104a   :  { %v1673_v9 = vadd.f32 %v1904_v7, %v1672_v19 }
0x104b   :  { %v1682_v10 = vmax.f32 %v1678_v13, 0.0 }
0x104c   :  { %v1681_v4 = vmax.f32 %v1673_v9, 0.0 }
0x104e   :  { %2254 = vmatprep.mubr.msk.f32.mxu0 %vm426_vm2, %v1681_v4 }
0x104f   :  { %2255 = vmatmul.mubr.msk.f32.vlgmr.msra.gmra.mrb[12].mxu0 %vm426_vm2, %v1682_v10 }
0x1122   :  { %v2256_v3 = vpop.f32.mrb[12].mxu0 }
0x1123   :  { %v1778_v20 = vadd.f32 %v2256_v3, %v1916_v11  ;;  %v1772_v22 = vpop.f32.mrb[13].mxu0 }
0x1124   :  { %v1773_v23 = vadd.f32 %v1916_v11, %v1772_v22 }
0x1125   :  { %v1782_v25 = vadd.f32 %v1778_v20, %v1586_v0 }
0x1126   :  { %v1781_v26 = vadd.f32 %v1773_v23, %v1585_v2 }
0x1127   :  { %v1790_v27 = vsel %vm147_vm0, %v1782_v25, 0.0 }
0x1128   :  { %1791 = vadd.xlane.f32.xlu0 %v1790_v27  ;;  %v1787_v28 = vsel %vm147_vm0, %v1781_v26, 0.0 }
0x1129   :  { %1788 = vadd.xlane.f32.xlu1 %v1787_v28 }
0x11b5   :  { %v1792_v44 = vpop.xlane.xlu0 %1791 }
0x11b6   :  { %v1794_v43 = vmul.f32 0.03125, %v1792_v44  ;;  %v1789_v29 = vpop.xlane.xlu1 %1788 }
0x11b7   :  { %v1793_v30 = vmul.f32 0.03125, %v1789_v29 }
0x11b8   :  { %v1796_v32 = vsub.f32 %v1782_v25, %v1794_v43 }
0x11b9   :  { %v1795_v33 = vsub.f32 %v1781_v26, %v1793_v30 }
0x11ba   :  { %v1798_v34 = vmul.f32 %v1796_v32, %v1796_v32 }
0x11bb   :  { %v1797_v35 = vmul.f32 %v1795_v33, %v1795_v33 }
0x11bc   :  { %v1802_v38 = vsel %vm147_vm0, %v1798_v34, 0.0 }
0x11bd   :  { %1803 = vadd.xlane.f32.xlu0 %v1802_v38  ;;  %v1799_v39 = vsel %vm147_vm0, %v1797_v35, 0.0 }
0x11be   :  { %1800 = vadd.xlane.f32.xlu1 %v1799_v39 }
0x124a   :  { %v1804_v40 = vpop.xlane.xlu0 %1803 }
0x124b   :  { %v1806_v41 = vmul.f32 0.03125, %v1804_v40  ;;  %v1801_v42 = vpop.xlane.xlu1 %1800 }
0x124c   :  { %v1805_v55 = vmul.f32 0.03125, %v1801_v42 }
0x124d   :  { %v1808_v49 = vadd.f32 1e-05, %v1806_v41 }
0x124e   :  { %v1807_v45 = vadd.f32 1e-05, %v1805_v55 }
0x124f   :  { %2572 = vrsqrt.f32 %v1808_v49 }
0x1250   :  { %2574 = vrsqrt.f32 %v1807_v45 }
0x1259   :  { %v2573_v46 = vpop.eup %2572 }
0x125a   :  { %v2575_v48 = vpop.eup %2574  ;;  %v1812_v53 = vmul.f32 %v2573_v46, %v1796_v32 }
0x125b   :  { %v1811_v51 = vmul.f32 %v2575_v48, %v1795_v33 }
0x125c   :  { %v1820_v1 = vmul.f32 %v1921_v47, %v1812_v53 }
0x125d   :  { %v1819_v31 = vmul.f32 %v1921_v47, %v1811_v51 }
0x125e   :  { %v1828_v6 = vadd.f32 %v1922_v50, %v1820_v1 }
0x125f   :  { %v1827_v8 = vadd.f32 %v1922_v50, %v1819_v31 }
0x1260   :  { %1830 = vst.msk [vmem:[%s3214_s17 + $0x8] sm:$0xff] %vm147_vm0, %v1828_v6 }
0x1261   :  { %1829 = vst.msk [vmem:[%s3214_s17] sm:$0xff] %vm147_vm0, %v1827_v8 }

</bundles_post_ra>
